<compile_context>
chip_gen: v7x
topology: tpu7x:2x2x1
jax: 0.10.0
libtpu: 0.0.40
codegen_flags: <defaults>
</compile_context>

<pallas_src>
import jax
import jax.numpy as jnp
from jax.experimental import pallas as pl
from jax.experimental.pallas import tpu as pltpu


def rulenet_kernel(rw_ref, base_ref, xT_ref, mu_pos_ref, mu_neg_ref, out_ref):
    # rw_ref:     SMEM (R,)  f32   rule weights (scalar reads)
    # base_ref:   SMEM (1,)  f32   10 + sum(rule_weights)   (hoisted base)
    # xT_ref:     VMEM (V, bb)     x0^T  -- features on sublanes, batch on lanes
    # mu_pos_ref: VMEM (R, V, bb)  sigmoid(conj)[:, :V], pre-broadcast over lanes
    # mu_neg_ref: VMEM (R, V, bb)  sigmoid(conj)[:, V:], pre-broadcast over lanes
    # out_ref:    VMEM (1, bb)
    R = mu_pos_ref.shape[0]
    bb = xT_ref.shape[1]

    xT = xT_ref[...]                  # (V, bb)
    y_pos = xT - 1.0                  # x - 1        for the positive literals
    y_neg = -xT                       # (1 - x) - 1  for the negated literals

    def body(r, acc):
        # min_j mu[r, j] * (x[j] - 1): sublane reduction = elementwise VPU
        # minimums across stacked vregs + one tiny intra-vreg reduce (XLU).
        m_pos = jnp.min(mu_pos_ref[r] * y_pos, axis=0, keepdims=True)   # (1, bb)
        m_neg = jnp.min(mu_neg_ref[r] * y_neg, axis=0, keepdims=True)   # (1, bb)
        m_r = jnp.minimum(m_pos, m_neg)
        return acc + rw_ref[r] * m_r                                    # weighted accumulate

    acc = jax.lax.fori_loop(0, R, body, jnp.zeros((1, bb), jnp.float32),
                            unroll=bool(R <= 64))
    out_ref[...] = acc + base_ref[0]   # hoisted: base + sum(rw) added once


def rulenet_forward(x0, conjunctions, rule_weights, *, batch_block=None):
    B, V = x0.shape
    R, F = conjunctions.shape
    assert F == 2 * V

    x0 = x0.astype(jnp.float32)
    conjunctions = conjunctions.astype(jnp.float32)
    rule_weights = rule_weights.astype(jnp.float32)

    # Batch block lives on lanes; 128 keeps vreg pressure comfortable.
    if batch_block is None:
        bb = 128 if B >= 128 else B
    else:
        bb = batch_block
    nb = -(-B // bb)                   # cdiv
    B_pad = nb * bb
    assert nb == 1 or bb % 128 == 0, "batch_block must be a multiple of 128 when tiling"

    # Wrapper-side layout plumbing (one-off, outside the hot loop):
    #   * sigmoid(conjunctions) computed once, not per grid step.
    #   * split into pos / neg halves (avoids in-kernel lane concat of x, 1-x).
    #   * pre-broadcast across the batch-lane dim so the kernel never does a
    #     cross-lane broadcast (VMEM footprint is identical due to lane padding).
    mu = jax.nn.sigmoid(conjunctions)                              # (R, 2V)
    mu_pos = jnp.broadcast_to(mu[:, :V, None], (R, V, bb))
    mu_neg = jnp.broadcast_to(mu[:, V:, None], (R, V, bb))

    xT = x0.T                                                      # (V, B), batch on lanes
    if B_pad != B:
        xT = jnp.pad(xT, ((0, 0), (0, B_pad - B)))

    # Algebraic hoist of the "+1" and the base.
    base_total = (10.0 + jnp.sum(rule_weights)).reshape((1,)).astype(jnp.float32)

    out = pl.pallas_call(
        rulenet_kernel,
        out_shape=jax.ShapeDtypeStruct((1, B_pad), jnp.float32),
        grid_spec=pltpu.PrefetchScalarGridSpec(
            num_scalar_prefetch=0,
            grid=(nb,),
            in_specs=[
                pl.BlockSpec(memory_space=pltpu.MemorySpace.SMEM),   # rule weights
                pl.BlockSpec(memory_space=pltpu.MemorySpace.SMEM),   # 10 + sum(rw)
                pl.BlockSpec((V, bb), lambda i: (0, i)),             # x0^T batch tile
                pl.BlockSpec((R, V, bb), lambda i: (0, 0, 0)),       # mu_pos (resident)
                pl.BlockSpec((R, V, bb), lambda i: (0, 0, 0)),       # mu_neg (resident)
            ],
            out_specs=pl.BlockSpec((1, bb), lambda i: (0, i)),       # lane-dense output
        ),
        compiler_params=pltpu.CompilerParams(
            dimension_semantics=("parallel",),
            vmem_limit_bytes=32 * 1024 * 1024,
        ),
    )(rule_weights, base_total, xT, mu_pos, mu_neg)
    return out[0, :B]                                              # (B,)


def rulenet_reference(x0, conjunctions, rule_weights):
    mu = jax.nn.sigmoid(conjunctions)
    x = jnp.concatenate([x0, 1.0 - x0], axis=1)
    x_pot = mu[None, :, :] * (x[:, None, :] - 1.0) + 1.0
    fit = jnp.min(x_pot, axis=-1)
    return 10.0 + jnp.sum(rule_weights[None, :] * fit, axis=-1)


if __name__ == "__main__":
    # Shapes consistent with the module's __init__:
    #   num_variables = 64 -> feature dim 2V = 128, num_conjunctions R = 16.
    B, V, R = 8, 64, 16

    key = jax.random.PRNGKey(0)
    k_conj, k_rw, k_x, k_x2 = jax.random.split(key, 4)

    # Parameter init mirroring the torch __init__ formulas (base hard-set to 10).
    conjunctions = 3.0 - 6.0 * jax.random.uniform(k_conj, (R, 2 * V), dtype=jnp.float32)
    rule_weights = 10.0 - 20.0 * jax.random.uniform(k_rw, (R,), dtype=jnp.float32)

    # Inputs are fuzzy truth values in [0, 1].
    x0 = jax.random.uniform(k_x, (B, V), dtype=jnp.float32)

    out = jax.block_until_ready(rulenet_forward(x0, conjunctions, rule_weights))
    ref = rulenet_reference(x0, conjunctions, rule_weights)
    assert out.shape == (B,)
    assert jnp.allclose(out, ref, atol=1e-4, rtol=1e-5)

    # Second check: multi-step "parallel" grid (v7x megacore path), 128-wide
    # lane-dense output stores, and batch padding (200 -> 2 blocks of 128).
    B2 = 200
    x0_big = jax.random.uniform(k_x2, (B2, V), dtype=jnp.float32)
    out2 = jax.block_until_ready(rulenet_forward(x0_big, conjunctions, rule_weights))
    ref2 = rulenet_reference(x0_big, conjunctions, rule_weights)
    assert out2.shape == (B2,)
    assert jnp.allclose(out2, ref2, atol=1e-4, rtol=1e-5)

    print("KERNEL_OK")
</pallas_src>

<mosaic_0001>
module attributes {stable_mosaic.version = 11 : i64} {
  func.func @rulenet_kernel(%arg0: i32, %arg1: memref<16xf32, #tpu.memory_space<smem>>, %arg2: memref<1xf32, #tpu.memory_space<smem>>, %arg3: memref<64x8xf32, #tpu.memory_space<vmem>>, %arg4: memref<16x64x8xf32, #tpu.memory_space<vmem>>, %arg5: memref<16x64x8xf32, #tpu.memory_space<vmem>>, %arg6: memref<1x8xf32, #tpu.memory_space<vmem>>) attributes {dimension_semantics = [#tpu.dimension_semantics<parallel>], iteration_bounds = array<i64: 1>, scalar_prefetch = 0 : i64, scratch_operands = 0 : i64, tpu.core_type = #tpu.core_type<tc>, window_params = [{transform_indices = @transform_0, window_bounds = array<i64: 16>}, {transform_indices = @transform_1, window_bounds = array<i64: 1>}, {transform_indices = @transform_2, window_bounds = array<i64: 64, 8>}, {pipeline_mode = #tpu.pipeline_mode<synchronous>, transform_indices = @transform_3, window_bounds = array<i64: 16, 64, 8>}, {pipeline_mode = #tpu.pipeline_mode<synchronous>, transform_indices = @transform_4, window_bounds = array<i64: 16, 64, 8>}, {transform_indices = @transform_5, window_bounds = array<i64: 1, 8>}]} {
    %c0 = arith.constant 0 : index
    %c0_0 = arith.constant 0 : index
    %0 = vector.load %arg3[%c0, %c0_0] : memref<64x8xf32, #tpu.memory_space<vmem>>, vector<64x8xf32>
    %cst = arith.constant 1.000000e+00 : f32
    %1 = vector.broadcast %cst : f32 to vector<64x8xf32>
    %2 = arith.subf %0, %1 : vector<64x8xf32>
    %cst_1 = arith.constant 0.000000e+00 : f32
    %3 = vector.broadcast %cst_1 : f32 to vector<64x8xf32>
    %4 = arith.subf %3, %0 : vector<64x8xf32>
    %cst_2 = arith.constant 0.000000e+00 : f32
    %5 = vector.broadcast %cst_2 : f32 to vector<1x8xf32>
    %c0_i32 = arith.constant 0 : i32
    %6 = arith.index_cast %c0_i32 : i32 to index
    %c0_3 = arith.constant 0 : index
    %c0_4 = arith.constant 0 : index
    %7 = vector.load %arg4[%6, %c0_3, %c0_4] : memref<16x64x8xf32, #tpu.memory_space<vmem>>, vector<1x64x8xf32>
    %8 = vector.shape_cast %7 : vector<1x64x8xf32> to vector<64x8xf32>
    %9 = arith.mulf %8, %2 : vector<64x8xf32>
    %cst_5 = arith.constant dense<0x7F800000> : vector<8xf32>
    %10 = vector.multi_reduction <minimumf>, %9, %cst_5 [0] : vector<64x8xf32> to vector<8xf32>
    %11 = vector.shape_cast %10 : vector<8xf32> to vector<1x8xf32>
    %12 = arith.index_cast %c0_i32 : i32 to index
    %c0_6 = arith.constant 0 : index
    %c0_7 = arith.constant 0 : index
    %13 = vector.load %arg5[%12, %c0_6, %c0_7] : memref<16x64x8xf32, #tpu.memory_space<vmem>>, vector<1x64x8xf32>
    %14 = vector.shape_cast %13 : vector<1x64x8xf32> to vector<64x8xf32>
    %15 = arith.mulf %14, %4 : vector<64x8xf32>
    %cst_8 = arith.constant dense<0x7F800000> : vector<8xf32>
    %16 = vector.multi_reduction <minimumf>, %15, %cst_8 [0] : vector<64x8xf32> to vector<8xf32>
    %17 = vector.shape_cast %16 : vector<8xf32> to vector<1x8xf32>
    %18 = arith.minimumf %11, %17 : vector<1x8xf32>
    %19 = arith.index_cast %c0_i32 : i32 to index
    %20 = memref.load %arg1[%19] : memref<16xf32, #tpu.memory_space<smem>>
    %21 = vector.broadcast %20 : f32 to vector<1x8xf32>
    %22 = arith.mulf %21, %18 : vector<1x8xf32>
    %23 = arith.addf %5, %22 : vector<1x8xf32>
    %c1_i32 = arith.constant 1 : i32
    %24 = arith.index_cast %c1_i32 : i32 to index
    %c0_9 = arith.constant 0 : index
    %c0_10 = arith.constant 0 : index
    %25 = vector.load %arg4[%24, %c0_9, %c0_10] : memref<16x64x8xf32, #tpu.memory_space<vmem>>, vector<1x64x8xf32>
    %26 = vector.shape_cast %25 : vector<1x64x8xf32> to vector<64x8xf32>
    %27 = arith.mulf %26, %2 : vector<64x8xf32>
    %cst_11 = arith.constant dense<0x7F800000> : vector<8xf32>
    %28 = vector.multi_reduction <minimumf>, %27, %cst_11 [0] : vector<64x8xf32> to vector<8xf32>
    %29 = vector.shape_cast %28 : vector<8xf32> to vector<1x8xf32>
    %30 = arith.index_cast %c1_i32 : i32 to index
    %c0_12 = arith.constant 0 : index
    %c0_13 = arith.constant 0 : index
    %31 = vector.load %arg5[%30, %c0_12, %c0_13] : memref<16x64x8xf32, #tpu.memory_space<vmem>>, vector<1x64x8xf32>
    %32 = vector.shape_cast %31 : vector<1x64x8xf32> to vector<64x8xf32>
    %33 = arith.mulf %32, %4 : vector<64x8xf32>
    %cst_14 = arith.constant dense<0x7F800000> : vector<8xf32>
    %34 = vector.multi_reduction <minimumf>, %33, %cst_14 [0] : vector<64x8xf32> to vector<8xf32>
    %35 = vector.shape_cast %34 : vector<8xf32> to vector<1x8xf32>
    %36 = arith.minimumf %29, %35 : vector<1x8xf32>
    %37 = arith.index_cast %c1_i32 : i32 to index
    %38 = memref.load %arg1[%37] : memref<16xf32, #tpu.memory_space<smem>>
    %39 = vector.broadcast %38 : f32 to vector<1x8xf32>
    %40 = arith.mulf %39, %36 : vector<1x8xf32>
    %41 = arith.addf %23, %40 : vector<1x8xf32>
    %c2_i32 = arith.constant 2 : i32
    %42 = arith.index_cast %c2_i32 : i32 to index
    %c0_15 = arith.constant 0 : index
    %c0_16 = arith.constant 0 : index
    %43 = vector.load %arg4[%42, %c0_15, %c0_16] : memref<16x64x8xf32, #tpu.memory_space<vmem>>, vector<1x64x8xf32>
    %44 = vector.shape_cast %43 : vector<1x64x8xf32> to vector<64x8xf32>
    %45 = arith.mulf %44, %2 : vector<64x8xf32>
    %cst_17 = arith.constant dense<0x7F800000> : vector<8xf32>
    %46 = vector.multi_reduction <minimumf>, %45, %cst_17 [0] : vector<64x8xf32> to vector<8xf32>
    %47 = vector.shape_cast %46 : vector<8xf32> to vector<1x8xf32>
    %48 = arith.index_cast %c2_i32 : i32 to index
    %c0_18 = arith.constant 0 : index
    %c0_19 = arith.constant 0 : index
    %49 = vector.load %arg5[%48, %c0_18, %c0_19] : memref<16x64x8xf32, #tpu.memory_space<vmem>>, vector<1x64x8xf32>
    %50 = vector.shape_cast %49 : vector<1x64x8xf32> to vector<64x8xf32>
    %51 = arith.mulf %50, %4 : vector<64x8xf32>
    %cst_20 = arith.constant dense<0x7F800000> : vector<8xf32>
    %52 = vector.multi_reduction <minimumf>, %51, %cst_20 [0] : vector<64x8xf32> to vector<8xf32>
    %53 = vector.shape_cast %52 : vector<8xf32> to vector<1x8xf32>
    %54 = arith.minimumf %47, %53 : vector<1x8xf32>
    %55 = arith.index_cast %c2_i32 : i32 to index
    %56 = memref.load %arg1[%55] : memref<16xf32, #tpu.memory_space<smem>>
    %57 = vector.broadcast %56 : f32 to vector<1x8xf32>
    %58 = arith.mulf %57, %54 : vector<1x8xf32>
    %59 = arith.addf %41, %58 : vector<1x8xf32>
    %c3_i32 = arith.constant 3 : i32
    %60 = arith.index_cast %c3_i32 : i32 to index
    %c0_21 = arith.constant 0 : index
    %c0_22 = arith.constant 0 : index
    %61 = vector.load %arg4[%60, %c0_21, %c0_22] : memref<16x64x8xf32, #tpu.memory_space<vmem>>, vector<1x64x8xf32>
    %62 = vector.shape_cast %61 : vector<1x64x8xf32> to vector<64x8xf32>
    %63 = arith.mulf %62, %2 : vector<64x8xf32>
    %cst_23 = arith.constant dense<0x7F800000> : vector<8xf32>
    %64 = vector.multi_reduction <minimumf>, %63, %cst_23 [0] : vector<64x8xf32> to vector<8xf32>
    %65 = vector.shape_cast %64 : vector<8xf32> to vector<1x8xf32>
    %66 = arith.index_cast %c3_i32 : i32 to index
    %c0_24 = arith.constant 0 : index
    %c0_25 = arith.constant 0 : index
    %67 = vector.load %arg5[%66, %c0_24, %c0_25] : memref<16x64x8xf32, #tpu.memory_space<vmem>>, vector<1x64x8xf32>
    %68 = vector.shape_cast %67 : vector<1x64x8xf32> to vector<64x8xf32>
    %69 = arith.mulf %68, %4 : vector<64x8xf32>
    %cst_26 = arith.constant dense<0x7F800000> : vector<8xf32>
    %70 = vector.multi_reduction <minimumf>, %69, %cst_26 [0] : vector<64x8xf32> to vector<8xf32>
    %71 = vector.shape_cast %70 : vector<8xf32> to vector<1x8xf32>
    %72 = arith.minimumf %65, %71 : vector<1x8xf32>
    %73 = arith.index_cast %c3_i32 : i32 to index
    %74 = memref.load %arg1[%73] : memref<16xf32, #tpu.memory_space<smem>>
    %75 = vector.broadcast %74 : f32 to vector<1x8xf32>
    %76 = arith.mulf %75, %72 : vector<1x8xf32>
    %77 = arith.addf %59, %76 : vector<1x8xf32>
    %c4_i32 = arith.constant 4 : i32
    %78 = arith.index_cast %c4_i32 : i32 to index
    %c0_27 = arith.constant 0 : index
    %c0_28 = arith.constant 0 : index
    %79 = vector.load %arg4[%78, %c0_27, %c0_28] : memref<16x64x8xf32, #tpu.memory_space<vmem>>, vector<1x64x8xf32>
    %80 = vector.shape_cast %79 : vector<1x64x8xf32> to vector<64x8xf32>
    %81 = arith.mulf %80, %2 : vector<64x8xf32>
    %cst_29 = arith.constant dense<0x7F800000> : vector<8xf32>
    %82 = vector.multi_reduction <minimumf>, %81, %cst_29 [0] : vector<64x8xf32> to vector<8xf32>
    %83 = vector.shape_cast %82 : vector<8xf32> to vector<1x8xf32>
    %84 = arith.index_cast %c4_i32 : i32 to index
    %c0_30 = arith.constant 0 : index
    %c0_31 = arith.constant 0 : index
    %85 = vector.load %arg5[%84, %c0_30, %c0_31] : memref<16x64x8xf32, #tpu.memory_space<vmem>>, vector<1x64x8xf32>
    %86 = vector.shape_cast %85 : vector<1x64x8xf32> to vector<64x8xf32>
    %87 = arith.mulf %86, %4 : vector<64x8xf32>
    %cst_32 = arith.constant dense<0x7F800000> : vector<8xf32>
    %88 = vector.multi_reduction <minimumf>, %87, %cst_32 [0] : vector<64x8xf32> to vector<8xf32>
    %89 = vector.shape_cast %88 : vector<8xf32> to vector<1x8xf32>
    %90 = arith.minimumf %83, %89 : vector<1x8xf32>
    %91 = arith.index_cast %c4_i32 : i32 to index
    %92 = memref.load %arg1[%91] : memref<16xf32, #tpu.memory_space<smem>>
    %93 = vector.broadcast %92 : f32 to vector<1x8xf32>
    %94 = arith.mulf %93, %90 : vector<1x8xf32>
    %95 = arith.addf %77, %94 : vector<1x8xf32>
    %c5_i32 = arith.constant 5 : i32
    %96 = arith.index_cast %c5_i32 : i32 to index
    %c0_33 = arith.constant 0 : index
    %c0_34 = arith.constant 0 : index
    %97 = vector.load %arg4[%96, %c0_33, %c0_34] : memref<16x64x8xf32, #tpu.memory_space<vmem>>, vector<1x64x8xf32>
    %98 = vector.shape_cast %97 : vector<1x64x8xf32> to vector<64x8xf32>
    %99 = arith.mulf %98, %2 : vector<64x8xf32>
    %cst_35 = arith.constant dense<0x7F800000> : vector<8xf32>
    %100 = vector.multi_reduction <minimumf>, %99, %cst_35 [0] : vector<64x8xf32> to vector<8xf32>
    %101 = vector.shape_cast %100 : vector<8xf32> to vector<1x8xf32>
    %102 = arith.index_cast %c5_i32 : i32 to index
    %c0_36 = arith.constant 0 : index
    %c0_37 = arith.constant 0 : index
    %103 = vector.load %arg5[%102, %c0_36, %c0_37] : memref<16x64x8xf32, #tpu.memory_space<vmem>>, vector<1x64x8xf32>
    %104 = vector.shape_cast %103 : vector<1x64x8xf32> to vector<64x8xf32>
    %105 = arith.mulf %104, %4 : vector<64x8xf32>
    %cst_38 = arith.constant dense<0x7F800000> : vector<8xf32>
    %106 = vector.multi_reduction <minimumf>, %105, %cst_38 [0] : vector<64x8xf32> to vector<8xf32>
    %107 = vector.shape_cast %106 : vector<8xf32> to vector<1x8xf32>
    %108 = arith.minimumf %101, %107 : vector<1x8xf32>
    %109 = arith.index_cast %c5_i32 : i32 to index
    %110 = memref.load %arg1[%109] : memref<16xf32, #tpu.memory_space<smem>>
    %111 = vector.broadcast %110 : f32 to vector<1x8xf32>
    %112 = arith.mulf %111, %108 : vector<1x8xf32>
    %113 = arith.addf %95, %112 : vector<1x8xf32>
    %c6_i32 = arith.constant 6 : i32
    %114 = arith.index_cast %c6_i32 : i32 to index
    %c0_39 = arith.constant 0 : index
    %c0_40 = arith.constant 0 : index
    %115 = vector.load %arg4[%114, %c0_39, %c0_40] : memref<16x64x8xf32, #tpu.memory_space<vmem>>, vector<1x64x8xf32>
    %116 = vector.shape_cast %115 : vector<1x64x8xf32> to vector<64x8xf32>
    %117 = arith.mulf %116, %2 : vector<64x8xf32>
    %cst_41 = arith.constant dense<0x7F800000> : vector<8xf32>
    %118 = vector.multi_reduction <minimumf>, %117, %cst_41 [0] : vector<64x8xf32> to vector<8xf32>
    %119 = vector.shape_cast %118 : vector<8xf32> to vector<1x8xf32>
    %120 = arith.index_cast %c6_i32 : i32 to index
    %c0_42 = arith.constant 0 : index
    %c0_43 = arith.constant 0 : index
    %121 = vector.load %arg5[%120, %c0_42, %c0_43] : memref<16x64x8xf32, #tpu.memory_space<vmem>>, vector<1x64x8xf32>
    %122 = vector.shape_cast %121 : vector<1x64x8xf32> to vector<64x8xf32>
    %123 = arith.mulf %122, %4 : vector<64x8xf32>
    %cst_44 = arith.constant dense<0x7F800000> : vector<8xf32>
    %124 = vector.multi_reduction <minimumf>, %123, %cst_44 [0] : vector<64x8xf32> to vector<8xf32>
    %125 = vector.shape_cast %124 : vector<8xf32> to vector<1x8xf32>
    %126 = arith.minimumf %119, %125 : vector<1x8xf32>
    %127 = arith.index_cast %c6_i32 : i32 to index
    %128 = memref.load %arg1[%127] : memref<16xf32, #tpu.memory_space<smem>>
    %129 = vector.broadcast %128 : f32 to vector<1x8xf32>
    %130 = arith.mulf %129, %126 : vector<1x8xf32>
    %131 = arith.addf %113, %130 : vector<1x8xf32>
    %c7_i32 = arith.constant 7 : i32
    %132 = arith.index_cast %c7_i32 : i32 to index
    %c0_45 = arith.constant 0 : index
    %c0_46 = arith.constant 0 : index
    %133 = vector.load %arg4[%132, %c0_45, %c0_46] : memref<16x64x8xf32, #tpu.memory_space<vmem>>, vector<1x64x8xf32>
    %134 = vector.shape_cast %133 : vector<1x64x8xf32> to vector<64x8xf32>
    %135 = arith.mulf %134, %2 : vector<64x8xf32>
    %cst_47 = arith.constant dense<0x7F800000> : vector<8xf32>
    %136 = vector.multi_reduction <minimumf>, %135, %cst_47 [0] : vector<64x8xf32> to vector<8xf32>
    %137 = vector.shape_cast %136 : vector<8xf32> to vector<1x8xf32>
    %138 = arith.index_cast %c7_i32 : i32 to index
    %c0_48 = arith.constant 0 : index
    %c0_49 = arith.constant 0 : index
    %139 = vector.load %arg5[%138, %c0_48, %c0_49] : memref<16x64x8xf32, #tpu.memory_space<vmem>>, vector<1x64x8xf32>
    %140 = vector.shape_cast %139 : vector<1x64x8xf32> to vector<64x8xf32>
    %141 = arith.mulf %140, %4 : vector<64x8xf32>
    %cst_50 = arith.constant dense<0x7F800000> : vector<8xf32>
    %142 = vector.multi_reduction <minimumf>, %141, %cst_50 [0] : vector<64x8xf32> to vector<8xf32>
    %143 = vector.shape_cast %142 : vector<8xf32> to vector<1x8xf32>
    %144 = arith.minimumf %137, %143 : vector<1x8xf32>
    %145 = arith.index_cast %c7_i32 : i32 to index
    %146 = memref.load %arg1[%145] : memref<16xf32, #tpu.memory_space<smem>>
    %147 = vector.broadcast %146 : f32 to vector<1x8xf32>
    %148 = arith.mulf %147, %144 : vector<1x8xf32>
    %149 = arith.addf %131, %148 : vector<1x8xf32>
    %c8_i32 = arith.constant 8 : i32
    %150 = arith.index_cast %c8_i32 : i32 to index
    %c0_51 = arith.constant 0 : index
    %c0_52 = arith.constant 0 : index
    %151 = vector.load %arg4[%150, %c0_51, %c0_52] : memref<16x64x8xf32, #tpu.memory_space<vmem>>, vector<1x64x8xf32>
    %152 = vector.shape_cast %151 : vector<1x64x8xf32> to vector<64x8xf32>
    %153 = arith.mulf %152, %2 : vector<64x8xf32>
    %cst_53 = arith.constant dense<0x7F800000> : vector<8xf32>
    %154 = vector.multi_reduction <minimumf>, %153, %cst_53 [0] : vector<64x8xf32> to vector<8xf32>
    %155 = vector.shape_cast %154 : vector<8xf32> to vector<1x8xf32>
    %156 = arith.index_cast %c8_i32 : i32 to index
    %c0_54 = arith.constant 0 : index
    %c0_55 = arith.constant 0 : index
    %157 = vector.load %arg5[%156, %c0_54, %c0_55] : memref<16x64x8xf32, #tpu.memory_space<vmem>>, vector<1x64x8xf32>
    %158 = vector.shape_cast %157 : vector<1x64x8xf32> to vector<64x8xf32>
    %159 = arith.mulf %158, %4 : vector<64x8xf32>
    %cst_56 = arith.constant dense<0x7F800000> : vector<8xf32>
    %160 = vector.multi_reduction <minimumf>, %159, %cst_56 [0] : vector<64x8xf32> to vector<8xf32>
    %161 = vector.shape_cast %160 : vector<8xf32> to vector<1x8xf32>
    %162 = arith.minimumf %155, %161 : vector<1x8xf32>
    %163 = arith.index_cast %c8_i32 : i32 to index
    %164 = memref.load %arg1[%163] : memref<16xf32, #tpu.memory_space<smem>>
    %165 = vector.broadcast %164 : f32 to vector<1x8xf32>
    %166 = arith.mulf %165, %162 : vector<1x8xf32>
    %167 = arith.addf %149, %166 : vector<1x8xf32>
    %c9_i32 = arith.constant 9 : i32
    %168 = arith.index_cast %c9_i32 : i32 to index
    %c0_57 = arith.constant 0 : index
    %c0_58 = arith.constant 0 : index
    %169 = vector.load %arg4[%168, %c0_57, %c0_58] : memref<16x64x8xf32, #tpu.memory_space<vmem>>, vector<1x64x8xf32>
    %170 = vector.shape_cast %169 : vector<1x64x8xf32> to vector<64x8xf32>
    %171 = arith.mulf %170, %2 : vector<64x8xf32>
    %cst_59 = arith.constant dense<0x7F800000> : vector<8xf32>
    %172 = vector.multi_reduction <minimumf>, %171, %cst_59 [0] : vector<64x8xf32> to vector<8xf32>
    %173 = vector.shape_cast %172 : vector<8xf32> to vector<1x8xf32>
    %174 = arith.index_cast %c9_i32 : i32 to index
    %c0_60 = arith.constant 0 : index
    %c0_61 = arith.constant 0 : index
    %175 = vector.load %arg5[%174, %c0_60, %c0_61] : memref<16x64x8xf32, #tpu.memory_space<vmem>>, vector<1x64x8xf32>
    %176 = vector.shape_cast %175 : vector<1x64x8xf32> to vector<64x8xf32>
    %177 = arith.mulf %176, %4 : vector<64x8xf32>
    %cst_62 = arith.constant dense<0x7F800000> : vector<8xf32>
    %178 = vector.multi_reduction <minimumf>, %177, %cst_62 [0] : vector<64x8xf32> to vector<8xf32>
    %179 = vector.shape_cast %178 : vector<8xf32> to vector<1x8xf32>
    %180 = arith.minimumf %173, %179 : vector<1x8xf32>
    %181 = arith.index_cast %c9_i32 : i32 to index
    %182 = memref.load %arg1[%181] : memref<16xf32, #tpu.memory_space<smem>>
    %183 = vector.broadcast %182 : f32 to vector<1x8xf32>
    %184 = arith.mulf %183, %180 : vector<1x8xf32>
    %185 = arith.addf %167, %184 : vector<1x8xf32>
    %c10_i32 = arith.constant 10 : i32
    %186 = arith.index_cast %c10_i32 : i32 to index
    %c0_63 = arith.constant 0 : index
    %c0_64 = arith.constant 0 : index
    %187 = vector.load %arg4[%186, %c0_63, %c0_64] : memref<16x64x8xf32, #tpu.memory_space<vmem>>, vector<1x64x8xf32>
    %188 = vector.shape_cast %187 : vector<1x64x8xf32> to vector<64x8xf32>
    %189 = arith.mulf %188, %2 : vector<64x8xf32>
    %cst_65 = arith.constant dense<0x7F800000> : vector<8xf32>
    %190 = vector.multi_reduction <minimumf>, %189, %cst_65 [0] : vector<64x8xf32> to vector<8xf32>
    %191 = vector.shape_cast %190 : vector<8xf32> to vector<1x8xf32>
    %192 = arith.index_cast %c10_i32 : i32 to index
    %c0_66 = arith.constant 0 : index
    %c0_67 = arith.constant 0 : index
    %193 = vector.load %arg5[%192, %c0_66, %c0_67] : memref<16x64x8xf32, #tpu.memory_space<vmem>>, vector<1x64x8xf32>
    %194 = vector.shape_cast %193 : vector<1x64x8xf32> to vector<64x8xf32>
    %195 = arith.mulf %194, %4 : vector<64x8xf32>
    %cst_68 = arith.constant dense<0x7F800000> : vector<8xf32>
    %196 = vector.multi_reduction <minimumf>, %195, %cst_68 [0] : vector<64x8xf32> to vector<8xf32>
    %197 = vector.shape_cast %196 : vector<8xf32> to vector<1x8xf32>
    %198 = arith.minimumf %191, %197 : vector<1x8xf32>
    %199 = arith.index_cast %c10_i32 : i32 to index
    %200 = memref.load %arg1[%199] : memref<16xf32, #tpu.memory_space<smem>>
    %201 = vector.broadcast %200 : f32 to vector<1x8xf32>
    %202 = arith.mulf %201, %198 : vector<1x8xf32>
    %203 = arith.addf %185, %202 : vector<1x8xf32>
    %c11_i32 = arith.constant 11 : i32
    %204 = arith.index_cast %c11_i32 : i32 to index
    %c0_69 = arith.constant 0 : index
    %c0_70 = arith.constant 0 : index
    %205 = vector.load %arg4[%204, %c0_69, %c0_70] : memref<16x64x8xf32, #tpu.memory_space<vmem>>, vector<1x64x8xf32>
    %206 = vector.shape_cast %205 : vector<1x64x8xf32> to vector<64x8xf32>
    %207 = arith.mulf %206, %2 : vector<64x8xf32>
    %cst_71 = arith.constant dense<0x7F800000> : vector<8xf32>
    %208 = vector.multi_reduction <minimumf>, %207, %cst_71 [0] : vector<64x8xf32> to vector<8xf32>
    %209 = vector.shape_cast %208 : vector<8xf32> to vector<1x8xf32>
    %210 = arith.index_cast %c11_i32 : i32 to index
    %c0_72 = arith.constant 0 : index
    %c0_73 = arith.constant 0 : index
    %211 = vector.load %arg5[%210, %c0_72, %c0_73] : memref<16x64x8xf32, #tpu.memory_space<vmem>>, vector<1x64x8xf32>
    %212 = vector.shape_cast %211 : vector<1x64x8xf32> to vector<64x8xf32>
    %213 = arith.mulf %212, %4 : vector<64x8xf32>
    %cst_74 = arith.constant dense<0x7F800000> : vector<8xf32>
    %214 = vector.multi_reduction <minimumf>, %213, %cst_74 [0] : vector<64x8xf32> to vector<8xf32>
    %215 = vector.shape_cast %214 : vector<8xf32> to vector<1x8xf32>
    %216 = arith.minimumf %209, %215 : vector<1x8xf32>
    %217 = arith.index_cast %c11_i32 : i32 to index
    %218 = memref.load %arg1[%217] : memref<16xf32, #tpu.memory_space<smem>>
    %219 = vector.broadcast %218 : f32 to vector<1x8xf32>
    %220 = arith.mulf %219, %216 : vector<1x8xf32>
    %221 = arith.addf %203, %220 : vector<1x8xf32>
    %c12_i32 = arith.constant 12 : i32
    %222 = arith.index_cast %c12_i32 : i32 to index
    %c0_75 = arith.constant 0 : index
    %c0_76 = arith.constant 0 : index
    %223 = vector.load %arg4[%222, %c0_75, %c0_76] : memref<16x64x8xf32, #tpu.memory_space<vmem>>, vector<1x64x8xf32>
    %224 = vector.shape_cast %223 : vector<1x64x8xf32> to vector<64x8xf32>
    %225 = arith.mulf %224, %2 : vector<64x8xf32>
    %cst_77 = arith.constant dense<0x7F800000> : vector<8xf32>
    %226 = vector.multi_reduction <minimumf>, %225, %cst_77 [0] : vector<64x8xf32> to vector<8xf32>
    %227 = vector.shape_cast %226 : vector<8xf32> to vector<1x8xf32>
    %228 = arith.index_cast %c12_i32 : i32 to index
    %c0_78 = arith.constant 0 : index
    %c0_79 = arith.constant 0 : index
    %229 = vector.load %arg5[%228, %c0_78, %c0_79] : memref<16x64x8xf32, #tpu.memory_space<vmem>>, vector<1x64x8xf32>
    %230 = vector.shape_cast %229 : vector<1x64x8xf32> to vector<64x8xf32>
    %231 = arith.mulf %230, %4 : vector<64x8xf32>
    %cst_80 = arith.constant dense<0x7F800000> : vector<8xf32>
    %232 = vector.multi_reduction <minimumf>, %231, %cst_80 [0] : vector<64x8xf32> to vector<8xf32>
    %233 = vector.shape_cast %232 : vector<8xf32> to vector<1x8xf32>
    %234 = arith.minimumf %227, %233 : vector<1x8xf32>
    %235 = arith.index_cast %c12_i32 : i32 to index
    %236 = memref.load %arg1[%235] : memref<16xf32, #tpu.memory_space<smem>>
    %237 = vector.broadcast %236 : f32 to vector<1x8xf32>
    %238 = arith.mulf %237, %234 : vector<1x8xf32>
    %239 = arith.addf %221, %238 : vector<1x8xf32>
    %c13_i32 = arith.constant 13 : i32
    %240 = arith.index_cast %c13_i32 : i32 to index
    %c0_81 = arith.constant 0 : index
    %c0_82 = arith.constant 0 : index
    %241 = vector.load %arg4[%240, %c0_81, %c0_82] : memref<16x64x8xf32, #tpu.memory_space<vmem>>, vector<1x64x8xf32>
    %242 = vector.shape_cast %241 : vector<1x64x8xf32> to vector<64x8xf32>
    %243 = arith.mulf %242, %2 : vector<64x8xf32>
    %cst_83 = arith.constant dense<0x7F800000> : vector<8xf32>
    %244 = vector.multi_reduction <minimumf>, %243, %cst_83 [0] : vector<64x8xf32> to vector<8xf32>
    %245 = vector.shape_cast %244 : vector<8xf32> to vector<1x8xf32>
    %246 = arith.index_cast %c13_i32 : i32 to index
    %c0_84 = arith.constant 0 : index
    %c0_85 = arith.constant 0 : index
    %247 = vector.load %arg5[%246, %c0_84, %c0_85] : memref<16x64x8xf32, #tpu.memory_space<vmem>>, vector<1x64x8xf32>
    %248 = vector.shape_cast %247 : vector<1x64x8xf32> to vector<64x8xf32>
    %249 = arith.mulf %248, %4 : vector<64x8xf32>
    %cst_86 = arith.constant dense<0x7F800000> : vector<8xf32>
    %250 = vector.multi_reduction <minimumf>, %249, %cst_86 [0] : vector<64x8xf32> to vector<8xf32>
    %251 = vector.shape_cast %250 : vector<8xf32> to vector<1x8xf32>
    %252 = arith.minimumf %245, %251 : vector<1x8xf32>
    %253 = arith.index_cast %c13_i32 : i32 to index
    %254 = memref.load %arg1[%253] : memref<16xf32, #tpu.memory_space<smem>>
    %255 = vector.broadcast %254 : f32 to vector<1x8xf32>
    %256 = arith.mulf %255, %252 : vector<1x8xf32>
    %257 = arith.addf %239, %256 : vector<1x8xf32>
    %c14_i32 = arith.constant 14 : i32
    %258 = arith.index_cast %c14_i32 : i32 to index
    %c0_87 = arith.constant 0 : index
    %c0_88 = arith.constant 0 : index
    %259 = vector.load %arg4[%258, %c0_87, %c0_88] : memref<16x64x8xf32, #tpu.memory_space<vmem>>, vector<1x64x8xf32>
    %260 = vector.shape_cast %259 : vector<1x64x8xf32> to vector<64x8xf32>
    %261 = arith.mulf %260, %2 : vector<64x8xf32>
    %cst_89 = arith.constant dense<0x7F800000> : vector<8xf32>
    %262 = vector.multi_reduction <minimumf>, %261, %cst_89 [0] : vector<64x8xf32> to vector<8xf32>
    %263 = vector.shape_cast %262 : vector<8xf32> to vector<1x8xf32>
    %264 = arith.index_cast %c14_i32 : i32 to index
    %c0_90 = arith.constant 0 : index
    %c0_91 = arith.constant 0 : index
    %265 = vector.load %arg5[%264, %c0_90, %c0_91] : memref<16x64x8xf32, #tpu.memory_space<vmem>>, vector<1x64x8xf32>
    %266 = vector.shape_cast %265 : vector<1x64x8xf32> to vector<64x8xf32>
    %267 = arith.mulf %266, %4 : vector<64x8xf32>
    %cst_92 = arith.constant dense<0x7F800000> : vector<8xf32>
    %268 = vector.multi_reduction <minimumf>, %267, %cst_92 [0] : vector<64x8xf32> to vector<8xf32>
    %269 = vector.shape_cast %268 : vector<8xf32> to vector<1x8xf32>
    %270 = arith.minimumf %263, %269 : vector<1x8xf32>
    %271 = arith.index_cast %c14_i32 : i32 to index
    %272 = memref.load %arg1[%271] : memref<16xf32, #tpu.memory_space<smem>>
    %273 = vector.broadcast %272 : f32 to vector<1x8xf32>
    %274 = arith.mulf %273, %270 : vector<1x8xf32>
    %275 = arith.addf %257, %274 : vector<1x8xf32>
    %c15_i32 = arith.constant 15 : i32
    %276 = arith.index_cast %c15_i32 : i32 to index
    %c0_93 = arith.constant 0 : index
    %c0_94 = arith.constant 0 : index
    %277 = vector.load %arg4[%276, %c0_93, %c0_94] : memref<16x64x8xf32, #tpu.memory_space<vmem>>, vector<1x64x8xf32>
    %278 = vector.shape_cast %277 : vector<1x64x8xf32> to vector<64x8xf32>
    %279 = arith.mulf %278, %2 : vector<64x8xf32>
    %cst_95 = arith.constant dense<0x7F800000> : vector<8xf32>
    %280 = vector.multi_reduction <minimumf>, %279, %cst_95 [0] : vector<64x8xf32> to vector<8xf32>
    %281 = vector.shape_cast %280 : vector<8xf32> to vector<1x8xf32>
    %282 = arith.index_cast %c15_i32 : i32 to index
    %c0_96 = arith.constant 0 : index
    %c0_97 = arith.constant 0 : index
    %283 = vector.load %arg5[%282, %c0_96, %c0_97] : memref<16x64x8xf32, #tpu.memory_space<vmem>>, vector<1x64x8xf32>
    %284 = vector.shape_cast %283 : vector<1x64x8xf32> to vector<64x8xf32>
    %285 = arith.mulf %284, %4 : vector<64x8xf32>
    %cst_98 = arith.constant dense<0x7F800000> : vector<8xf32>
    %286 = vector.multi_reduction <minimumf>, %285, %cst_98 [0] : vector<64x8xf32> to vector<8xf32>
    %287 = vector.shape_cast %286 : vector<8xf32> to vector<1x8xf32>
    %288 = arith.minimumf %281, %287 : vector<1x8xf32>
    %289 = arith.index_cast %c15_i32 : i32 to index
    %290 = memref.load %arg1[%289] : memref<16xf32, #tpu.memory_space<smem>>
    %291 = vector.broadcast %290 : f32 to vector<1x8xf32>
    %292 = arith.mulf %291, %288 : vector<1x8xf32>
    %293 = arith.addf %275, %292 : vector<1x8xf32>
    %c16_i32 = arith.constant 16 : i32
    %c0_99 = arith.constant 0 : index
    %294 = memref.load %arg2[%c0_99] : memref<1xf32, #tpu.memory_space<smem>>
    %295 = vector.broadcast %294 : f32 to vector<1x8xf32>
    %296 = arith.addf %293, %295 : vector<1x8xf32>
    %c0_100 = arith.constant 0 : index
    %c0_101 = arith.constant 0 : index
    %297 = vector.load %arg6[%c0_100, %c0_101] : memref<1x8xf32, #tpu.memory_space<vmem>>, vector<1x8xf32>
    tpu.vector_store %arg6[%c0_100, %c0_101], %296 {strides = array<i32>} : memref<1x8xf32, #tpu.memory_space<vmem>>, vector<1x8xf32>,
    return
  }
  func.func @transform_0(%arg0: i32) -> i32 {
    %c0_i32 = arith.constant 0 : i32
    %c0_i32_0 = arith.constant 0 : i32
    return %c0_i32 : i32
  }
  func.func @transform_1(%arg0: i32) -> i32 {
    %c0_i32 = arith.constant 0 : i32
    %c0_i32_0 = arith.constant 0 : i32
    return %c0_i32 : i32
  }
  func.func @transform_2(%arg0: i32) -> (i32, i32) {
    %c0_i32 = arith.constant 0 : i32
    %c0_i32_0 = arith.constant 0 : i32
    return %c0_i32, %arg0 : i32, i32
  }
  func.func @transform_3(%arg0: i32) -> (i32, i32, i32) {
    %c0_i32 = arith.constant 0 : i32
    %c0_i32_0 = arith.constant 0 : i32
    %c0_i32_1 = arith.constant 0 : i32
    %c0_i32_2 = arith.constant 0 : i32
    return %c0_i32, %c0_i32_0, %c0_i32_1 : i32, i32, i32
  }
  func.func @transform_4(%arg0: i32) -> (i32, i32, i32) {
    %c0_i32 = arith.constant 0 : i32
    %c0_i32_0 = arith.constant 0 : i32
    %c0_i32_1 = arith.constant 0 : i32
    %c0_i32_2 = arith.constant 0 : i32
    return %c0_i32, %c0_i32_0, %c0_i32_1 : i32, i32, i32
  }
  func.func @transform_5(%arg0: i32) -> (i32, i32) {
    %c0_i32 = arith.constant 0 : i32
    %c0_i32_0 = arith.constant 0 : i32
    return %c0_i32, %arg0 : i32, i32
  }
}

</mosaic_0001>

<bundles_post_ra>
// kernel: tpu_custom_call.1
= control target key start
LH: loop header
LB: loop body
LE: loop exit
PB: predicated region body
PF: predicated region fallthrough
CT: control target
= control target key end

     0   :  { %11 = vsyncpa [#allocation5], 0  ;;  %s3225_s0 = inlined_call_operand.vmem [shape: f32[16], index: 0, kind: input, shape index: {}]   ;;  %s3226_s1 = inlined_call_operand.<no memory space> [shape: f32[1], index: 1, kind: input, shape index: {}]   ;;  %s3227_s2 = inlined_call_operand.vmem [shape: f32[64,8], index: 2, kind: input, shape index: {}]   ;;  %s3228_s3 = inlined_call_operand.vmem [shape: f32[16,64,8], index: 3, kind: input, shape index: {}]   ;;  %s3229_s4 = inlined_call_operand.vmem [shape: f32[16,64,8], index: 4, kind: input, shape index: {}]   ;;  %s3230_s5 = inlined_call_operand.hbm [shape: f32[1,8], index: 5, kind: output, shape index: {}]  }
   0x1   :  { %12 = vsyncpa [#allocation4], 0  ;;  %s19_s20 = sshll.u32 %s3225_s0, 4  ;;  %s20_s20 = int_to_ptr.vmem [resolvable:$true] %s19_s20 }
   0x2   :  { %s1639_s21 = scalar_lea.vmem %s20_s20, 16  ;;  %p1644_p1 = scmp.lt.s32.totalorder %s20_s20, %s20_s20 }
   0x3   :  { %p1640_p0 = scmp.ne.s32.totalorder %s20_s20, %s1639_s21  ;;  %p1645_p2 = scmp.lt.s32.totalorder %s1639_s21, %s1639_s21 }
   0x5   :  { %p1646_p3 = por %p1645_p2, %p1644_p1 }
   0x7   :  { %p1647_p4 = pnand %p1646_p3, %p1640_p0 }
   0x9   :  { %1650 = shalt.err (!%p1647_p4)
}
   0xa   :  { %s1677_s22 = smov [#allocation3]  }
   0xb   :  { %22 = dma.vmem_to_smem %s20_s20, 16, %s1677_s22, [#allocation5]  }
   0xc   :  { %1673 = dma.done.wait [#allocation5], 16  }
   0xd   :  { %1674 = vsyncadd [#allocation5], 4294967280 }
   0xe   :  { %34 = sfence }
   0xf   :  { %v35_v0 = vld [vmem:[%s3227_s2] sm:$0xff]  ;;  %v36_v1 = vld [vmem:[%s3227_s2 + $0x8] sm:$0xff]  ;;  %v37_v2 = vld [vmem:[%s3227_s2 + $0x10] sm:$0xff]  ;;  %vm75_vm0 = vcmask 64512   ;;  %s1919_s22 = sld [smem:[#allocation3]]  ;;  %s2005_s28 = sld [smem:[#allocation3 + $0x1]] }
  0x10   :  { %v38_v3 = vld [vmem:[%s3227_s2 + $0x18] sm:$0xff]  ;;  %v39_v4 = vld [vmem:[%s3227_s2 + $0x20] sm:$0xff]  ;;  %v40_v5 = vld [vmem:[%s3227_s2 + $0x28] sm:$0xff]  ;;  %v1730_v6 = vadd.f32 -1.0, %v35_v0  ;;  %v1732_v7 = vadd.f32 -1.0, %v36_v1  ;;  %v1734_v8 = vadd.f32 -1.0, %v37_v2 }
  0x11   :  { %v41_v9 = vld [vmem:[%s3227_s2 + $0x30] sm:$0xff]  ;;  %v42_v10 = vld [vmem:[%s3227_s2 + $0x38] sm:$0xff]  ;;  %v1742_v11 = vadd.f32 -1.0, %v38_v3  ;;  %v1744_v12 = vadd.f32 -1.0, %v39_v4  ;;  %v1746_v13 = vadd.f32 -1.0, %v40_v5  ;;  %v1748_v14 = vsub.f32 0.0, %v35_v0 }
  0x12   :  { %v1750_v15 = vadd.f32 -1.0, %v41_v9  ;;  %v1752_v16 = vadd.f32 -1.0, %v42_v10  ;;  %v1754_v17 = vsub.f32 0.0, %v36_v1  ;;  %v1756_v18 = vsub.f32 0.0, %v37_v2  ;;  %v59_v19 = vld [vmem:[%s3228_s3] sm:$0xff]  ;;  %v60_v20 = vld [vmem:[%s3228_s3 + $0x8] sm:$0xff] }
  0x13   :  { %v1764_v21 = vsub.f32 0.0, %v38_v3  ;;  %v1766_v22 = vsub.f32 0.0, %v39_v4  ;;  %v1768_v23 = vsub.f32 0.0, %v40_v5  ;;  %v1770_v24 = vsub.f32 0.0, %v41_v9  ;;  %v61_v25 = vld [vmem:[%s3228_s3 + $0x10] sm:$0xff]  ;;  %v62_v26 = vld [vmem:[%s3228_s3 + $0x18] sm:$0xff] }
  0x14   :  { %v1778_v27 = vsub.f32 0.0, %v42_v10  ;;  %v63_v28 = vld [vmem:[%s3228_s3 + $0x20] sm:$0xff]  ;;  %v64_v29 = vld [vmem:[%s3228_s3 + $0x28] sm:$0xff]  ;;  %v65_v30 = vld [vmem:[%s3228_s3 + $0x30] sm:$0xff]  ;;  %v67_v31 = vmul.f32 %v1730_v6, %v59_v19  ;;  %v68_v32 = vmul.f32 %v1732_v7, %v60_v20  ;;  %v69_v33 = vmul.f32 %v1734_v8, %v61_v25  ;;  %s2169_s12 = sld [smem:[#allocation3 + $0x2]]  ;;  %s2186_s16 = sld [smem:[#allocation3 + $0x3]] }
  0x15   :  { %v66_v34 = vld [vmem:[%s3228_s3 + $0x38] sm:$0xff]  ;;  %v70_v35 = vmul.f32 %v1742_v11, %v62_v26  ;;  %v71_v36 = vmul.f32 %v1744_v12, %v63_v28  ;;  %v72_v37 = vmul.f32 %v1746_v13, %v64_v29  ;;  %v73_v38 = vmul.f32 %v1750_v15, %v65_v30  ;;  %v97_v39 = vld [vmem:[%s3229_s4] sm:$0xff]  ;;  %v98_v44 = vld [vmem:[%s3229_s4 + $0x8] sm:$0xff]  ;;  %s2267_s24 = sld [smem:[#allocation3 + $0x4]]  ;;  %s2416_s19 = sld [smem:[#allocation3 + $0x5]] }
  0x16   :  { %v74_v40 = vmul.f32 %v1752_v16, %v66_v34  ;;  %v76_v41 = vsel %vm75_vm0, %v67_v31, inf  ;;  %v77_v42 = vsel %vm75_vm0, %v68_v32, inf  ;;  %v78_v43 = vsel %vm75_vm0, %v69_v33, inf  ;;  %v99_v45 = vld [vmem:[%s3229_s4 + $0x10] sm:$0xff]  ;;  %v100_v46 = vld [vmem:[%s3229_s4 + $0x18] sm:$0xff]  ;;  %v101_v51 = vld [vmem:[%s3229_s4 + $0x20] sm:$0xff] }
  0x17   :  { %v79_v47 = vsel %vm75_vm0, %v70_v35, inf  ;;  %v80_v48 = vsel %vm75_vm0, %v71_v36, inf  ;;  %v82_v49 = vsel %vm75_vm0, %v72_v37, inf  ;;  %v84_v50 = vsel %vm75_vm0, %v73_v38, inf  ;;  %v102_v52 = vld [vmem:[%s3229_s4 + $0x28] sm:$0xff]  ;;  %v103_v57 = vld [vmem:[%s3229_s4 + $0x30] sm:$0xff] }
  0x18   :  { %v81_v53 = vmin.f32 %v76_v41, %v80_v48  ;;  %v83_v54 = vmin.f32 %v77_v42, %v82_v49  ;;  %v85_v55 = vmin.f32 %v78_v43, %v84_v50  ;;  %v86_v56 = vsel %vm75_vm0, %v74_v40, inf  ;;  %v104_v58 = vld [vmem:[%s3229_s4 + $0x38] sm:$0xff]  ;;  %v1382_v20 = vld [vmem:[%s3228_s3 + $0x40] sm:$0xff]  ;;  %v1383_v25 = vld [vmem:[%s3228_s3 + $0x48] sm:$0xff]  ;;  %s2462_s11 = sld [smem:[#allocation3 + $0x6]]  ;;  %s2636_s25 = sld [smem:[#allocation3 + $0x8]] }
  0x19   :  { %v87_v59 = vmin.f32 %v79_v47, %v86_v56  ;;  %v105_v60 = vmul.f32 %v97_v39, %v1748_v14  ;;  %v106_v61 = vmul.f32 %v98_v44, %v1754_v17  ;;  %v107_v62 = vmul.f32 %v99_v45, %v1756_v18  ;;  %v1384_v31 = vld [vmem:[%s3228_s3 + $0x50] sm:$0xff]  ;;  %v1385_v32 = vld [vmem:[%s3228_s3 + $0x58] sm:$0xff]  ;;  %v1386_v33 = vld [vmem:[%s3228_s3 + $0x60] sm:$0xff]  ;;  %s2909_s17 = sld [smem:[#allocation3 + $0xa]]  ;;  %s3175_s30 = sld [smem:[#allocation3 + $0xc]] }
  0x1a   :  { %v108_v63 = vmul.f32 %v100_v46, %v1764_v21  ;;  %v109_v0 = vmul.f32 %v101_v51, %v1766_v22  ;;  %v110_v1 = vmul.f32 %v102_v52, %v1768_v23  ;;  %v111_v2 = vmul.f32 %v103_v57, %v1770_v24  ;;  %v1387_v37 = vld [vmem:[%s3228_s3 + $0x68] sm:$0xff]  ;;  %v1388_v38 = vld [vmem:[%s3228_s3 + $0x70] sm:$0xff]  ;;  %v1389_v41 = vld [vmem:[%s3228_s3 + $0x78] sm:$0xff]  ;;  %s1619_s10 = sld [smem:[#allocation3 + $0xe]]  ;;  %s1678_s13 = smov [#allocation6]  }
  0x1b   :  { %v112_v3 = vmul.f32 %v104_v58, %v1778_v27  ;;  %v113_v4 = vsel %vm75_vm0, %v105_v60, inf  ;;  %v114_v5 = vsel %vm75_vm0, %v106_v61, inf  ;;  %v115_v9 = vsel %vm75_vm0, %v107_v62, inf  ;;  %v1390_v58 = vld [vmem:[%s3229_s4 + $0x40] sm:$0xff]  ;;  %v1392_v60 = vld [vmem:[%s3229_s4 + $0x50] sm:$0xff]  ;;  %s1365_s14 = sshll.u32 %s1678_s13, 4  ;;  %s1366_s14 = int_to_ptr.vmem [resolvable:$true] %s1365_s14 }
  0x1c   :  { %v116_v10 = vsel %vm75_vm0, %v108_v63, inf  ;;  %v117_v19 = vsel %vm75_vm0, %v109_v0, inf  ;;  %v88_v26 = vmin.f32 %v81_v53, %v83_v54  ;;  %v89_v28 = vmin.f32 %v85_v55, %v87_v59  ;;  %v1391_v59 = vld [vmem:[%s3229_s4 + $0x48] sm:$0xff]  ;;  %s1651_s2 = scalar_lea.vmem %s1366_s14, 16  ;;  %s1655_s15 = scalar_lea.vmem %s1366_s14, 32 }
  0x1d   :  { %v119_v29 = vsel %vm75_vm0, %v110_v1, inf  ;;  %v121_v30 = vsel %vm75_vm0, %v111_v2, inf  ;;  %v118_v34 = vmin.f32 %v113_v4, %v117_v19  ;;  %v123_v36 = vsel %vm75_vm0, %v112_v3, inf  ;;  %v1393_v1 = vld [vmem:[%s3229_s4 + $0x58] sm:$0xff]  ;;  %p1652_p5 = scmp.ne.s32.totalorder %s1366_s14, %s1651_s2  ;;  %p1656_p6 = scmp.lt.s32.totalorder %s1366_s14, %s1366_s14 }
  0x1e   :  { %v120_v35 = vmin.f32 %v114_v5, %v119_v29  ;;  %v122_v39 = vmin.f32 %v115_v9, %v121_v30  ;;  %v124_v40 = vmin.f32 %v116_v10, %v123_v36  ;;  %v148_v42 = vmul.f32 %v1382_v20, %v1730_v6  ;;  %v1394_v5 = vld [vmem:[%s3229_s4 + $0x60] sm:$0xff]  ;;  %v1395_v9 = vld [vmem:[%s3229_s4 + $0x68] sm:$0xff]  ;;  %v1396_v10 = vld [vmem:[%s3229_s4 + $0x70] sm:$0xff]  ;;  %p1657_p7 = scmp.lt.s32.totalorder %s1655_s15, %s1651_s2 }
  0x1f   :  { %v149_v43 = vmul.f32 %v1383_v25, %v1732_v7  ;;  %v150_v44 = vmul.f32 %v1384_v31, %v1734_v8  ;;  %v151_v45 = vmul.f32 %v1385_v32, %v1742_v11  ;;  %v152_v46 = vmul.f32 %v1386_v33, %v1744_v12  ;;  %v1397_v20 = vld [vmem:[%s3229_s4 + $0x78] sm:$0xff] }
  0x20   :  { %v90_v47 = vmin.f32 %v88_v26, %v89_v28  ;;  %v153_v48 = vmul.f32 %v1387_v37, %v1746_v13  ;;  %v154_v49 = vmul.f32 %v1388_v38, %v1750_v15  ;;  %v155_v50 = vmul.f32 %v1389_v41, %v1752_v16  ;;  %p1658_p8 = por %p1657_p7, %p1656_p6 }
  0x21   :  { %v156_v51 = vsel %vm75_vm0, %v148_v42, inf  ;;  %v157_v52 = vsel %vm75_vm0, %v149_v43, inf  ;;  %v158_v53 = vsel %vm75_vm0, %v150_v44, inf  ;;  %v125_v54 = vmin.f32 %v118_v34, %v120_v35  ;;  %v1399_v42 = vld [vmem:[%s3228_s3 + $0x80] sm:$0xff] }
  0x22   :  { %v126_v55 = vmin.f32 %v122_v39, %v124_v40  ;;  %v159_v56 = vsel %vm75_vm0, %v151_v45, inf  ;;  %v160_v57 = vsel %vm75_vm0, %v152_v46, inf  ;;  %v162_v62 = vsel %vm75_vm0, %v153_v48, inf  ;;  %p1659_p9 = pnand %p1658_p8, %p1652_p5 }
  0x23   :  { %v161_v61 = vmin.f32 %v156_v51, %v160_v57  ;;  %v164_v63 = vsel %vm75_vm0, %v154_v49, inf  ;;  %v166_v0 = vsel %vm75_vm0, %v155_v50, inf  ;;  %v91_v2 = vrot.slane %v90_v47, 4  ;;  %v1404_v57 = vld [vmem:[%s3228_s3 + $0xa8] sm:$0xff] }
  0x24   :  { %v163_v3 = vmin.f32 %v157_v52, %v162_v62  ;;  %v165_v4 = vmin.f32 %v158_v53, %v164_v63  ;;  %v167_v19 = vmin.f32 %v159_v56, %v166_v0  ;;  %v186_v25 = vmul.f32 %v1390_v58, %v1748_v14  ;;  %v1401_v52 = vld [vmem:[%s3228_s3 + $0x90] sm:$0xff]  ;;  %v1402_v53 = vld [vmem:[%s3228_s3 + $0x98] sm:$0xff] }
  0x25   :  { %v187_v26 = vmul.f32 %v1391_v59, %v1754_v17  ;;  %v188_v28 = vmul.f32 %v1392_v60, %v1756_v18  ;;  %v127_v29 = vmin.f32 %v125_v54, %v126_v55  ;;  %v189_v31 = vmul.f32 %v1393_v1, %v1764_v21  ;;  %v1403_v54 = vld [vmem:[%s3228_s3 + $0xa0] sm:$0xff]  ;;  %v1405_v58 = vld [vmem:[%s3228_s3 + $0xb0] sm:$0xff]  ;;  %v1406_v63 = vld [vmem:[%s3228_s3 + $0xb8] sm:$0xff] }
  0x26   :  { %v168_v30 = vmin.f32 %v161_v61, %v163_v3  ;;  %v169_v32 = vmin.f32 %v165_v4, %v167_v19  ;;  %v190_v33 = vmul.f32 %v1394_v5, %v1766_v22  ;;  %v191_v34 = vmul.f32 %v1395_v9, %v1768_v23 }
  0x27   :  { %v192_v35 = vmul.f32 %v1396_v10, %v1770_v24  ;;  %v92_v36 = vmin.f32 %v90_v47, %v91_v2  ;;  %v193_v37 = vmul.f32 %v1397_v20, %v1778_v27  ;;  %v194_v38 = vsel %vm75_vm0, %v186_v25, inf  ;;  %v1400_v47 = vld [vmem:[%s3228_s3 + $0x88] sm:$0xff] }
  0x28   :  { %v170_v39 = vmin.f32 %v168_v30, %v169_v32  ;;  %v195_v40 = vsel %vm75_vm0, %v187_v26, inf  ;;  %v196_v41 = vsel %vm75_vm0, %v188_v28, inf  ;;  %v197_v43 = vsel %vm75_vm0, %v189_v31, inf }
  0x29   :  { %v198_v44 = vsel %vm75_vm0, %v190_v33, inf  ;;  %v200_v45 = vsel %vm75_vm0, %v191_v34, inf  ;;  %v202_v46 = vsel %vm75_vm0, %v192_v35, inf  ;;  %v128_v48 = vrot.slane %v127_v29, 4  ;;  %v1408_v33 = vld [vmem:[%s3229_s4 + $0x88] sm:$0xff] }
  0x2a   :  { %v199_v49 = vmin.f32 %v194_v38, %v198_v44  ;;  %v201_v50 = vmin.f32 %v195_v40, %v200_v45  ;;  %v203_v51 = vmin.f32 %v196_v41, %v202_v46  ;;  %v93_v55 = vrot.slane %v92_v36, 2  ;;  %v1409_v38 = vld [vmem:[%s3229_s4 + $0x90] sm:$0xff]  ;;  %v1411_v44 = vld [vmem:[%s3229_s4 + $0xa0] sm:$0xff]  ;;  %v1412_v45 = vld [vmem:[%s3229_s4 + $0xa8] sm:$0xff] }
  0x2b   :  { %v204_v56 = vsel %vm75_vm0, %v193_v37, inf  ;;  %v229_v59 = vmul.f32 %v1399_v42, %v1730_v6  ;;  %v171_v60 = vrot.slane %v170_v39, 4  ;;  %v230_v0 = vmul.f32 %v1400_v47, %v1732_v7 }
  0x2c   :  { %v205_v61 = vmin.f32 %v197_v43, %v204_v56  ;;  %v206_v62 = vmin.f32 %v199_v49, %v201_v50  ;;  %v231_v1 = vmul.f32 %v1401_v52, %v1734_v8  ;;  %v232_v2 = vmul.f32 %v1402_v53, %v1742_v11  ;;  %v1410_v43 = vld [vmem:[%s3229_s4 + $0x98] sm:$0xff] }
  0x2d   :  { %v233_v3 = vmul.f32 %v1403_v54, %v1744_v12  ;;  %v129_v4 = vmin.f32 %v127_v29, %v128_v48  ;;  %v234_v9 = vmul.f32 %v1404_v57, %v1746_v13  ;;  %v235_v10 = vmul.f32 %v1405_v58, %v1750_v15  ;;  %v1407_v29 = vld [vmem:[%s3229_s4 + $0x80] sm:$0xff]  ;;  %v1413_v48 = vld [vmem:[%s3229_s4 + $0xb0] sm:$0xff]  ;;  %v1414_v49 = vld [vmem:[%s3229_s4 + $0xb8] sm:$0xff] }
  0x2e   :  { %v207_v5 = vmin.f32 %v203_v51, %v205_v61  ;;  %v136_v19 = vstv %s1919_s22  ;;  %v236_v20 = vmul.f32 %v1406_v63, %v1752_v16  ;;  %v237_v25 = vsel %vm75_vm0, %v229_v59, inf  ;;  %s2938_s22 = sld [smem:[#allocation3 + $0xb]] }
  0x2f   :  { %v238_v26 = vsel %vm75_vm0, %v230_v0, inf  ;;  %v1965_v28 = vmin.f32 %v92_v36, %v93_v55  ;;  %v172_v30 = vmin.f32 %v170_v39, %v171_v60  ;;  %v239_v32 = vsel %vm75_vm0, %v231_v1, inf }
  0x30   :  { %v208_v31 = vmin.f32 %v206_v62, %v207_v5  ;;  %v240_v34 = vsel %vm75_vm0, %v232_v2, inf  ;;  %v241_v35 = vsel %vm75_vm0, %v233_v3, inf  ;;  %v243_v37 = vsel %vm75_vm0, %v234_v9, inf }
  0x31   :  { %v245_v36 = vsel %vm75_vm0, %v235_v10, inf  ;;  %v130_v39 = vrot.slane %v129_v4, 2  ;;  %v242_v41 = vmin.f32 %v237_v25, %v241_v35  ;;  %v244_v42 = vmin.f32 %v238_v26, %v243_v37  ;;  %v1416_v25 = vld [vmem:[%s3228_s3 + $0xc0] sm:$0xff]  ;;  %v1417_v26 = vld [vmem:[%s3228_s3 + $0xc8] sm:$0xff] }
  0x32   :  { %v209_v40 = vrot.slane %v208_v31, 4  ;;  %v246_v46 = vmin.f32 %v239_v32, %v245_v36  ;;  %v247_v47 = vsel %vm75_vm0, %v236_v20, inf  ;;  %v267_v50 = vmul.f32 %v1407_v29, %v1748_v14 }
  0x33   :  { %v268_v51 = vmul.f32 %v1408_v33, %v1754_v17  ;;  %v173_v52 = vrot.slane %v172_v30, 2  ;;  %v248_v54 = vmin.f32 %v240_v34, %v247_v47  ;;  %v249_v55 = vmin.f32 %v242_v41, %v244_v42  ;;  %v1419_v34 = vld [vmem:[%s3228_s3 + $0xd8] sm:$0xff]  ;;  %v1422_v41 = vld [vmem:[%s3228_s3 + $0xf0] sm:$0xff] }
  0x34   :  { %v210_v53 = vmin.f32 %v208_v31, %v209_v40  ;;  %v269_v56 = vmul.f32 %v1409_v38, %v1756_v18  ;;  %v270_v57 = vmul.f32 %v1410_v43, %v1764_v21  ;;  %v271_v58 = vmul.f32 %v1411_v44, %v1766_v22  ;;  %v1421_v40 = vld [vmem:[%s3228_s3 + $0xe8] sm:$0xff] }
  0x35   :  { %v272_v59 = vmul.f32 %v1412_v45, %v1768_v23  ;;  %v250_v61 = vmin.f32 %v246_v46, %v248_v54  ;;  %v273_v62 = vmul.f32 %v1413_v48, %v1770_v24  ;;  %v274_v63 = vmul.f32 %v1414_v49, %v1778_v27 }
  0x36   :  { %v211_v60 = vrot.slane %v210_v53, 2  ;;  %v275_v0 = vsel %vm75_vm0, %v267_v50, inf  ;;  %v276_v1 = vsel %vm75_vm0, %v268_v51, inf  ;;  %v277_v2 = vsel %vm75_vm0, %v269_v56, inf }
  0x37   :  { %v278_v3 = vsel %vm75_vm0, %v270_v57, inf  ;;  %v95_v5 = vrot.slane %v1965_v28, 1  ;;  %v131_v9 = vmin.f32 %v129_v4, %v130_v39  ;;  %v279_v10 = vsel %vm75_vm0, %v271_v58, inf  ;;  %v1418_v4 = vld [vmem:[%s3228_s3 + $0xd0] sm:$0xff]  ;;  %v1420_v39 = vld [vmem:[%s3228_s3 + $0xe0] sm:$0xff] }
  0x38   :  { %v281_v20 = vsel %vm75_vm0, %v272_v59, inf  ;;  %v280_v31 = vmin.f32 %v275_v0, %v279_v10  ;;  %v283_v29 = vsel %vm75_vm0, %v273_v62, inf  ;;  %v285_v33 = vsel %vm75_vm0, %v274_v63, inf }
  0x39   :  { %v282_v32 = vmin.f32 %v276_v1, %v281_v20  ;;  %v174_v35 = vmin.f32 %v172_v30, %v173_v52  ;;  %v251_v37 = vmin.f32 %v249_v55, %v250_v61  ;;  %v284_v36 = vmin.f32 %v277_v2, %v283_v29  ;;  %v1423_v30 = vld [vmem:[%s3228_s3 + $0xf8] sm:$0xff]  ;;  %v1424_v1 = vld [vmem:[%s3229_s4 + $0xc0] sm:$0xff]  ;;  %v1425_v2 = vld [vmem:[%s3229_s4 + $0xc8] sm:$0xff] }
  0x3a   :  { %v286_v38 = vmin.f32 %v278_v3, %v285_v33  ;;  %v212_v42 = vmin.f32 %v210_v53, %v211_v60  ;;  %v310_v44 = vmul.f32 %v1416_v25, %v1730_v6  ;;  %v311_v45 = vmul.f32 %v1417_v26, %v1732_v7  ;;  %v1426_v25 = vld [vmem:[%s3229_s4 + $0xd0] sm:$0xff]  ;;  %v1427_v33 = vld [vmem:[%s3229_s4 + $0xd8] sm:$0xff] }
  0x3b   :  { %v287_v43 = vmin.f32 %v280_v31, %v282_v32  ;;  %v2043_v46 = vmin.f32 %v1965_v28, %v95_v5  ;;  %v132_v47 = vrot.slane %v131_v9, 1  ;;  %v312_v49 = vmul.f32 %v1418_v4, %v1734_v8  ;;  %v1428_v4 = vld [vmem:[%s3229_s4 + $0xe0] sm:$0xff] }
  0x3c   :  { %v288_v48 = vmin.f32 %v284_v36, %v286_v38  ;;  %v313_v50 = vmul.f32 %v1419_v34, %v1742_v11  ;;  %v314_v51 = vmul.f32 %v1420_v39, %v1744_v12  ;;  %v315_v52 = vmul.f32 %v1421_v40, %v1746_v13  ;;  %v1429_v34 = vld [vmem:[%s3229_s4 + $0xe8] sm:$0xff] }
  0x3d   :  { %v316_v53 = vmul.f32 %v1422_v41, %v1750_v15  ;;  %v175_v54 = vrot.slane %v174_v35, 1  ;;  %v252_v55 = vrot.slane %v251_v37, 4  ;;  %v317_v57 = vmul.f32 %v1423_v30, %v1752_v16 }
  0x3e   :  { %v289_v56 = vmin.f32 %v287_v43, %v288_v48  ;;  %v213_v58 = vrot.slane %v212_v42, 1  ;;  %v217_v28 = vstv %s2005_s28  ;;  %v318_v59 = vsel %vm75_vm0, %v310_v44, inf }
  0x3f   :  { %v319_v60 = vsel %vm75_vm0, %v311_v45, inf  ;;  %v320_v62 = vsel %vm75_vm0, %v312_v49, inf  ;;  %v321_v63 = vsel %vm75_vm0, %v313_v50, inf  ;;  %v322_v0 = vsel %vm75_vm0, %v314_v51, inf }
  0x40   :  { %v290_v61 = vrot.slane %v289_v56, 4  ;;  %v323_v3 = vmin.f32 %v318_v59, %v322_v0  ;;  %v324_v5 = vsel %vm75_vm0, %v315_v52, inf  ;;  %v326_v10 = vsel %vm75_vm0, %v316_v53, inf }
  0x41   :  { %v328_v20 = vsel %vm75_vm0, %v317_v57, inf  ;;  %v133_v26 = vmin.f32 %v131_v9, %v132_v47  ;;  %v176_v31 = vmin.f32 %v174_v35, %v175_v54  ;;  %v253_v32 = vmin.f32 %v251_v37, %v252_v55  ;;  %v1430_v9 = vld [vmem:[%s3229_s4 + $0xf0] sm:$0xff]  ;;  %v1431_v35 = vld [vmem:[%s3229_s4 + $0xf8] sm:$0xff] }
  0x42   :  { %v325_v29 = vmin.f32 %v319_v60, %v324_v5  ;;  %v327_v36 = vmin.f32 %v320_v62, %v326_v10  ;;  %v329_v38 = vmin.f32 %v321_v63, %v328_v20  ;;  %v348_v37 = vmul.f32 %v1424_v1, %v1748_v14  ;;  %v1435_v1 = vld [vmem:[%s3228_s3 + $0x110] sm:$0xff] }
  0x43   :  { %v349_v39 = vmul.f32 %v1425_v2, %v1754_v17  ;;  %v214_v40 = vmin.f32 %v212_v42, %v213_v58  ;;  %v291_v41 = vmin.f32 %v289_v56, %v290_v61  ;;  %v350_v30 = vmul.f32 %v1426_v25, %v1756_v18  ;;  %v1433_v56 = vld [vmem:[%s3228_s3 + $0x100] sm:$0xff]  ;;  %v1436_v2 = vld [vmem:[%s3228_s3 + $0x118] sm:$0xff]  ;;  %v1438_v25 = vld [vmem:[%s3228_s3 + $0x128] sm:$0xff] }
  0x44   :  { %v330_v43 = vmin.f32 %v323_v3, %v325_v29  ;;  %v331_v44 = vmin.f32 %v327_v36, %v329_v38  ;;  %v351_v45 = vmul.f32 %v1427_v33, %v1764_v21  ;;  %v352_v47 = vmul.f32 %v1428_v4, %v1766_v22  ;;  %v1437_v3 = vld [vmem:[%s3228_s3 + $0x120] sm:$0xff] }
  0x45   :  { %v353_v48 = vmul.f32 %v1429_v34, %v1768_v23  ;;  %v254_v49 = vrot.slane %v253_v32, 2  ;;  %v354_v50 = vmul.f32 %v1430_v9, %v1770_v24  ;;  %v355_v51 = vmul.f32 %v1431_v35, %v1778_v27 }
  0x46   :  { %v356_v52 = vsel %vm75_vm0, %v348_v37, inf  ;;  %v134_v42 = vmin.f32 %v2043_v46, %v133_v26  ;;  %v332_v53 = vmin.f32 %v330_v43, %v331_v44  ;;  %v357_v54 = vsel %vm75_vm0, %v349_v39, inf  ;;  %v1434_v46 = vld [vmem:[%s3228_s3 + $0x108] sm:$0xff]  ;;  %v1439_v26 = vld [vmem:[%s3228_s3 + $0x130] sm:$0xff] }
  0x47   :  { %v358_v55 = vsel %vm75_vm0, %v350_v30, inf  ;;  %v359_v57 = vsel %vm75_vm0, %v351_v45, inf  ;;  %v360_v58 = vsel %vm75_vm0, %v352_v47, inf  ;;  %v362_v59 = vsel %vm75_vm0, %v353_v48, inf }
  0x48   :  { %v364_v60 = vsel %vm75_vm0, %v354_v50, inf  ;;  %v292_v61 = vrot.slane %v291_v41, 2  ;;  %v361_v62 = vmin.f32 %v356_v52, %v360_v58  ;;  %v363_v63 = vmin.f32 %v357_v54, %v362_v59  ;;  %v1441_v50 = vld [vmem:[%s3229_s4 + $0x100] sm:$0xff]  ;;  %v1444_v59 = vld [vmem:[%s3229_s4 + $0x118] sm:$0xff] }
  0x49   :  { %v365_v0 = vmin.f32 %v358_v55, %v364_v60  ;;  %v215_v5 = vmin.f32 %v176_v31, %v214_v40  ;;  %v2115_v10 = vmin.f32 %v253_v32, %v254_v49  ;;  %v366_v20 = vsel %vm75_vm0, %v355_v51, inf  ;;  %v1440_v31 = vld [vmem:[%s3228_s3 + $0x138] sm:$0xff]  ;;  %v1445_v60 = vld [vmem:[%s3229_s4 + $0x120] sm:$0xff] }
  0x4a   :  { %v391_v29 = vmul.f32 %v1433_v56, %v1730_v6  ;;  %v333_v33 = vrot.slane %v332_v53, 4  ;;  %v367_v4 = vmin.f32 %v359_v57, %v366_v20  ;;  %v368_v34 = vmin.f32 %v361_v62, %v363_v63  ;;  %v1447_v63 = vld [vmem:[%s3229_s4 + $0x130] sm:$0xff] }
  0x4b   :  { %v392_v32 = vmul.f32 %v1434_v46, %v1732_v7  ;;  %v2131_v36 = vmul.f32 %v136_v19, %v134_v42  ;;  %v393_v38 = vmul.f32 %v1435_v1, %v1734_v8  ;;  %v394_v9 = vmul.f32 %v1436_v2, %v1742_v11  ;;  %v1446_v46 = vld [vmem:[%s3229_s4 + $0x128] sm:$0xff] }
  0x4c   :  { %v395_v35 = vmul.f32 %v1437_v3, %v1744_v12  ;;  %v293_v37 = vmin.f32 %v291_v41, %v292_v61  ;;  %v369_v39 = vmin.f32 %v365_v0, %v367_v4  ;;  %v396_v40 = vmul.f32 %v1438_v25, %v1746_v13  ;;  %v1448_v0 = vld [vmem:[%s3229_s4 + $0x138] sm:$0xff] }
  0x4d   :  { %v397_v43 = vmul.f32 %v1439_v26, %v1750_v15  ;;  %v2140_v30 = vmul.f32 %v217_v28, %v215_v5  ;;  %v398_v44 = vmul.f32 %v1440_v31, %v1752_v16  ;;  %v399_v19 = vsel %vm75_vm0, %v391_v29, inf  ;;  %v1442_v28 = vld [vmem:[%s3229_s4 + $0x108] sm:$0xff] }
  0x4e   :  { %v400_v45 = vsel %vm75_vm0, %v392_v32, inf  ;;  %v256_v47 = vrot.slane %v2115_v10, 1  ;;  %v334_v48 = vmin.f32 %v332_v53, %v333_v33  ;;  %v370_v49 = vmin.f32 %v368_v34, %v369_v39  ;;  %v1443_v53 = vld [vmem:[%s3229_s4 + $0x110] sm:$0xff] }
  0x4f   :  { %v401_v41 = vsel %vm75_vm0, %v393_v38, inf  ;;  %v402_v51 = vsel %vm75_vm0, %v394_v9, inf  ;;  %v403_v52 = vsel %vm75_vm0, %v395_v35, inf  ;;  %v405_v42 = vsel %vm75_vm0, %v396_v40, inf }
  0x50   :  { %v407_v54 = vsel %vm75_vm0, %v397_v43, inf  ;;  %v294_v55 = vrot.slane %v293_v37, 1  ;;  %v371_v56 = vrot.slane %v370_v49, 4  ;;  %v404_v57 = vmin.f32 %v399_v19, %v403_v52 }
  0x51   :  { %v406_v58 = vmin.f32 %v400_v45, %v405_v42  ;;  %v408_v61 = vmin.f32 %v401_v41, %v407_v54  ;;  %v409_v62 = vsel %vm75_vm0, %v398_v44, inf  ;;  %v429_v1 = vmul.f32 %v1441_v50, %v1748_v14  ;;  %v1451_v41 = vld [vmem:[%s3228_s3 + $0x148] sm:$0xff] }
  0x52   :  { %v430_v2 = vmul.f32 %v1442_v28, %v1754_v17  ;;  %v335_v3 = vrot.slane %v334_v48, 2  ;;  %v372_v5 = vmin.f32 %v370_v49, %v371_v56  ;;  %v410_v20 = vmin.f32 %v402_v51, %v409_v62  ;;  %v1450_v49 = vld [vmem:[%s3228_s3 + $0x140] sm:$0xff]  ;;  %v1455_v56 = vld [vmem:[%s3228_s3 + $0x168] sm:$0xff] }
  0x53   :  { %v411_v25 = vmin.f32 %v404_v57, %v406_v58  ;;  %v431_v26 = vmul.f32 %v1443_v53, %v1756_v18  ;;  %v432_v29 = vmul.f32 %v1444_v59, %v1764_v21  ;;  %v433_v33 = vmul.f32 %v1445_v60, %v1766_v22  ;;  %v1456_v57 = vld [vmem:[%s3228_s3 + $0x170] sm:$0xff] }
  0x54   :  { %v434_v4 = vmul.f32 %v1446_v46, %v1768_v23  ;;  %v373_v34 = vrot.slane %v372_v5, 2  ;;  %v412_v31 = vmin.f32 %v408_v61, %v410_v20  ;;  %v435_v32 = vmul.f32 %v1447_v63, %v1770_v24 }
  0x55   :  { %v436_v38 = vmul.f32 %v1448_v0, %v1778_v27  ;;  %v437_v9 = vsel %vm75_vm0, %v429_v1, inf  ;;  %v438_v35 = vsel %vm75_vm0, %v430_v2, inf  ;;  %v439_v39 = vsel %vm75_vm0, %v431_v26, inf }
  0x56   :  { %v440_v40 = vsel %vm75_vm0, %v432_v29, inf  ;;  %v257_v43 = vmin.f32 %v2115_v10, %v256_v47  ;;  %v295_v44 = vmin.f32 %v293_v37, %v294_v55  ;;  %v441_v19 = vsel %vm75_vm0, %v433_v33, inf  ;;  %v1452_v37 = vld [vmem:[%s3228_s3 + $0x150] sm:$0xff]  ;;  %v1453_v47 = vld [vmem:[%s3228_s3 + $0x158] sm:$0xff]  ;;  %v1454_v55 = vld [vmem:[%s3228_s3 + $0x160] sm:$0xff] }
  0x57   :  { %v443_v45 = vsel %vm75_vm0, %v434_v4, inf  ;;  %v442_v50 = vmin.f32 %v437_v9, %v441_v19  ;;  %v445_v51 = vsel %vm75_vm0, %v435_v32, inf  ;;  %v447_v10 = vsel %vm75_vm0, %v436_v38, inf  ;;  %v1458_v9 = vld [vmem:[%s3229_s4 + $0x140] sm:$0xff]  ;;  %v1460_v19 = vld [vmem:[%s3229_s4 + $0x150] sm:$0xff] }
  0x58   :  { %v444_v28 = vmin.f32 %v438_v35, %v443_v45  ;;  %v336_v52 = vmin.f32 %v334_v48, %v335_v3  ;;  %v413_v42 = vmin.f32 %v411_v25, %v412_v31  ;;  %v446_v54 = vmin.f32 %v439_v39, %v445_v51  ;;  %v1457_v48 = vld [vmem:[%s3228_s3 + $0x178] sm:$0xff]  ;;  %v1459_v35 = vld [vmem:[%s3229_s4 + $0x148] sm:$0xff]  ;;  %v1462_v51 = vld [vmem:[%s3229_s4 + $0x160] sm:$0xff] }
  0x59   :  { %v448_v53 = vmin.f32 %v440_v40, %v447_v10  ;;  %v298_v58 = vstv %s2169_s12  ;;  %v374_v59 = vmin.f32 %v372_v5, %v373_v34  ;;  %v472_v60 = vmul.f32 %v1450_v49, %v1730_v6  ;;  %v1463_v10 = vld [vmem:[%s3229_s4 + $0x168] sm:$0xff] }
  0x5a   :  { %v473_v46 = vmul.f32 %v1451_v41, %v1732_v7  ;;  %v219_v61 = vadd.f32 %v2140_v30, %v2131_v36  ;;  %v449_v62 = vmin.f32 %v442_v50, %v444_v28  ;;  %v474_v0 = vmul.f32 %v1452_v37, %v1734_v8  ;;  %v1461_v28 = vld [vmem:[%s3229_s4 + $0x158] sm:$0xff] }
  0x5b   :  { %v450_v63 = vmin.f32 %v446_v54, %v448_v53  ;;  %v475_v1 = vmul.f32 %v1453_v47, %v1742_v11  ;;  %v476_v2 = vmul.f32 %v1454_v55, %v1744_v12  ;;  %v477_v3 = vmul.f32 %v1455_v56, %v1746_v13 }
  0x5c   :  { %v478_v5 = vmul.f32 %v1456_v57, %v1750_v15  ;;  %v296_v20 = vmin.f32 %v257_v43, %v295_v44  ;;  %v337_v25 = vrot.slane %v336_v52, 1  ;;  %v414_v26 = vrot.slane %v413_v42, 4 }
  0x5d   :  { %v479_v29 = vmul.f32 %v1457_v48, %v1752_v16  ;;  %v375_v33 = vrot.slane %v374_v59, 1  ;;  %v379_v4 = vstv %s2186_s16  ;;  %v480_v36 = vsel %vm75_vm0, %v472_v60, inf  ;;  %s2553_s16 = sld [smem:[#allocation3 + $0x7]] }
  0x5e   :  { %v481_v30 = vsel %vm75_vm0, %v473_v46, inf  ;;  %v451_v34 = vmin.f32 %v449_v62, %v450_v63  ;;  %v482_v31 = vsel %vm75_vm0, %v474_v0, inf  ;;  %v483_v32 = vsel %vm75_vm0, %v475_v1, inf }
  0x5f   :  { %v484_v38 = vsel %vm75_vm0, %v476_v2, inf  ;;  %v486_v40 = vsel %vm75_vm0, %v477_v3, inf  ;;  %v488_v43 = vsel %vm75_vm0, %v478_v5, inf  ;;  %v490_v44 = vsel %vm75_vm0, %v479_v29, inf }
  0x60   :  { %v485_v39 = vmin.f32 %v480_v36, %v484_v38  ;;  %v299_v45 = vmul.f32 %v298_v58, %v296_v20  ;;  %v338_v49 = vmin.f32 %v336_v52, %v337_v25  ;;  %v415_v41 = vmin.f32 %v413_v42, %v414_v26  ;;  %v1464_v52 = vld [vmem:[%s3229_s4 + $0x170] sm:$0xff]  ;;  %v1465_v42 = vld [vmem:[%s3229_s4 + $0x178] sm:$0xff]  ;;  %v1467_v25 = vld [vmem:[%s3228_s3 + $0x180] sm:$0xff] }
  0x61   :  { %v487_v50 = vmin.f32 %v481_v30, %v486_v40  ;;  %v489_v37 = vmin.f32 %v482_v31, %v488_v43  ;;  %v491_v47 = vmin.f32 %v483_v32, %v490_v44  ;;  %v510_v54 = vmul.f32 %v1458_v9, %v1748_v14  ;;  %v1469_v9 = vld [vmem:[%s3228_s3 + $0x190] sm:$0xff]  ;;  %v1472_v44 = vld [vmem:[%s3228_s3 + $0x1a8] sm:$0xff] }
  0x62   :  { %v511_v53 = vmul.f32 %v1459_v35, %v1754_v17  ;;  %v376_v55 = vmin.f32 %v374_v59, %v375_v33  ;;  %v452_v56 = vrot.slane %v451_v34, 4  ;;  %v512_v58 = vmul.f32 %v1460_v19, %v1756_v18  ;;  %v1470_v35 = vld [vmem:[%s3228_s3 + $0x198] sm:$0xff]  ;;  %v1473_v19 = vld [vmem:[%s3228_s3 + $0x1b0] sm:$0xff] }
  0x63   :  { %v492_v57 = vmin.f32 %v485_v39, %v487_v50  ;;  %v493_v48 = vmin.f32 %v489_v37, %v491_v47  ;;  %v513_v60 = vmul.f32 %v1461_v28, %v1764_v21  ;;  %v514_v46 = vmul.f32 %v1462_v51, %v1766_v22  ;;  %v1471_v39 = vld [vmem:[%s3228_s3 + $0x1a0] sm:$0xff] }
  0x64   :  { %v515_v62 = vmul.f32 %v1463_v10, %v1768_v23  ;;  %v416_v63 = vrot.slane %v415_v41, 2  ;;  %v516_v0 = vmul.f32 %v1464_v52, %v1770_v24  ;;  %v517_v1 = vmul.f32 %v1465_v42, %v1778_v27 }
  0x65   :  { %v518_v59 = vsel %vm75_vm0, %v510_v54, inf  ;;  %v2276_v2 = vadd.f32 %v299_v45, %v219_v61  ;;  %v494_v3 = vmin.f32 %v492_v57, %v493_v48  ;;  %v519_v5 = vsel %vm75_vm0, %v511_v53, inf  ;;  %v1468_v61 = vld [vmem:[%s3228_s3 + $0x188] sm:$0xff] }
  0x66   :  { %v520_v20 = vsel %vm75_vm0, %v512_v58, inf  ;;  %v521_v26 = vsel %vm75_vm0, %v513_v60, inf  ;;  %v522_v29 = vsel %vm75_vm0, %v514_v46, inf  ;;  %v524_v33 = vsel %vm75_vm0, %v515_v62, inf }
  0x67   :  { %v526_v36 = vsel %vm75_vm0, %v516_v0, inf  ;;  %v453_v30 = vmin.f32 %v451_v34, %v452_v56  ;;  %v523_v31 = vmin.f32 %v518_v59, %v522_v29  ;;  %v525_v32 = vmin.f32 %v519_v5, %v524_v33  ;;  %v1475_v0 = vld [vmem:[%s3229_s4 + $0x180] sm:$0xff] }
  0x68   :  { %v527_v38 = vmin.f32 %v520_v20, %v526_v36  ;;  %v377_v40 = vmin.f32 %v338_v49, %v376_v55  ;;  %v2299_v43 = vmin.f32 %v415_v41, %v416_v63  ;;  %v528_v34 = vsel %vm75_vm0, %v517_v1, inf  ;;  %v1474_v49 = vld [vmem:[%s3228_s3 + $0x1b8] sm:$0xff] }
  0x69   :  { %v553_v45 = vmul.f32 %v1467_v25, %v1730_v6  ;;  %v495_v50 = vrot.slane %v494_v3, 4  ;;  %v529_v28 = vmin.f32 %v521_v26, %v528_v34  ;;  %v530_v51 = vmin.f32 %v523_v31, %v525_v32  ;;  %v1478_v36 = vld [vmem:[%s3229_s4 + $0x198] sm:$0xff]  ;;  %v1480_v31 = vld [vmem:[%s3229_s4 + $0x1a8] sm:$0xff] }
  0x6a   :  { %v554_v41 = vmul.f32 %v1468_v61, %v1732_v7  ;;  %v460_v10 = vstv %s2267_s24  ;;  %v555_v37 = vmul.f32 %v1469_v9, %v1734_v8  ;;  %v556_v47 = vmul.f32 %v1470_v35, %v1742_v11  ;;  %v1479_v61 = vld [vmem:[%s3229_s4 + $0x1a0] sm:$0xff]  ;;  %v1482_v9 = vld [vmem:[%s3229_s4 + $0x1b8] sm:$0xff] }
  0x6b   :  { %v557_v52 = vmul.f32 %v1471_v39, %v1744_v12  ;;  %v454_v42 = vrot.slane %v453_v30, 2  ;;  %v531_v54 = vmin.f32 %v527_v38, %v529_v28  ;;  %v558_v53 = vmul.f32 %v1472_v44, %v1746_v13 }
  0x6c   :  { %v559_v55 = vmul.f32 %v1473_v19, %v1750_v15  ;;  %v2321_v56 = vmul.f32 %v379_v4, %v377_v40  ;;  %v560_v57 = vmul.f32 %v1474_v49, %v1752_v16  ;;  %v561_v58 = vsel %vm75_vm0, %v553_v45, inf  ;;  %v1476_v4 = vld [vmem:[%s3229_s4 + $0x188] sm:$0xff] }
  0x6d   :  { %v562_v48 = vsel %vm75_vm0, %v554_v41, inf  ;;  %v418_v60 = vrot.slane %v2299_v43, 1  ;;  %v496_v46 = vmin.f32 %v494_v3, %v495_v50  ;;  %v532_v62 = vmin.f32 %v530_v51, %v531_v54  ;;  %v1477_v3 = vld [vmem:[%s3229_s4 + $0x190] sm:$0xff] }
  0x6e   :  { %v563_v63 = vsel %vm75_vm0, %v555_v37, inf  ;;  %v564_v1 = vsel %vm75_vm0, %v556_v47, inf  ;;  %v565_v59 = vsel %vm75_vm0, %v557_v52, inf  ;;  %v567_v5 = vsel %vm75_vm0, %v558_v53, inf }
  0x6f   :  { %v569_v20 = vsel %vm75_vm0, %v559_v55, inf  ;;  %v455_v25 = vmin.f32 %v453_v30, %v454_v42  ;;  %v533_v26 = vrot.slane %v532_v62, 4  ;;  %v566_v29 = vmin.f32 %v561_v58, %v565_v59  ;;  %v1481_v30 = vld [vmem:[%s3229_s4 + $0x1b0] sm:$0xff] }
  0x70   :  { %v568_v33 = vmin.f32 %v562_v48, %v567_v5  ;;  %v570_v32 = vmin.f32 %v563_v63, %v569_v20  ;;  %v571_v38 = vsel %vm75_vm0, %v560_v57, inf  ;;  %v591_v35 = vmul.f32 %v1475_v0, %v1748_v14  ;;  %v1485_v63 = vld [vmem:[%s3228_s3 + $0x1c8] sm:$0xff]  ;;  %v1486_v5 = vld [vmem:[%s3228_s3 + $0x1d0] sm:$0xff]  ;;  %v1487_v20 = vld [vmem:[%s3228_s3 + $0x1d8] sm:$0xff] }
  0x71   :  { %v592_v39 = vmul.f32 %v1476_v4, %v1754_v17  ;;  %v497_v40 = vrot.slane %v496_v46, 2  ;;  %v534_v34 = vmin.f32 %v532_v62, %v533_v26  ;;  %v572_v44 = vmin.f32 %v564_v1, %v571_v38  ;;  %v1484_v62 = vld [vmem:[%s3228_s3 + $0x1c0] sm:$0xff] }
  0x72   :  { %v573_v19 = vmin.f32 %v566_v29, %v568_v33  ;;  %v593_v45 = vmul.f32 %v1477_v3, %v1756_v18  ;;  %v594_v50 = vmul.f32 %v1478_v36, %v1764_v21  ;;  %v595_v28 = vmul.f32 %v1479_v61, %v1766_v22  ;;  %v1488_v36 = vld [vmem:[%s3228_s3 + $0x1e0] sm:$0xff]  ;;  %v1489_v61 = vld [vmem:[%s3228_s3 + $0x1e8] sm:$0xff] }
  0x73   :  { %v596_v51 = vmul.f32 %v1480_v31, %v1768_v23  ;;  %v535_v49 = vrot.slane %v534_v34, 2  ;;  %v574_v41 = vmin.f32 %v570_v32, %v572_v44  ;;  %v597_v37 = vmul.f32 %v1481_v30, %v1770_v24  ;;  %v1490_v31 = vld [vmem:[%s3228_s3 + $0x1f0] sm:$0xff] }
  0x74   :  { %v598_v47 = vmul.f32 %v1482_v9, %v1778_v27  ;;  %v599_v52 = vsel %vm75_vm0, %v591_v35, inf  ;;  %v600_v42 = vsel %vm75_vm0, %v592_v39, inf  ;;  %v601_v54 = vsel %vm75_vm0, %v593_v45, inf }
  0x75   :  { %v602_v53 = vsel %vm75_vm0, %v594_v50, inf  ;;  %v456_v55 = vrot.slane %v455_v25, 1  ;;  %v575_v57 = vmin.f32 %v573_v19, %v574_v41  ;;  %v603_v58 = vsel %vm75_vm0, %v595_v28, inf }
  0x76   :  { %v605_v48 = vsel %vm75_vm0, %v596_v51, inf  ;;  %v604_v0 = vmin.f32 %v599_v52, %v603_v58  ;;  %v607_v1 = vsel %vm75_vm0, %v597_v37, inf  ;;  %v609_v59 = vsel %vm75_vm0, %v598_v47, inf }
  0x77   :  { %v606_v4 = vmin.f32 %v600_v42, %v605_v48  ;;  %v498_v3 = vmin.f32 %v496_v46, %v497_v40  ;;  %v576_v26 = vrot.slane %v575_v57, 4  ;;  %v608_v29 = vmin.f32 %v601_v54, %v607_v1  ;;  %v1491_v46 = vld [vmem:[%s3228_s3 + $0x1f8] sm:$0xff]  ;;  %v1492_v42 = vld [vmem:[%s3229_s4 + $0x1c0] sm:$0xff]  ;;  %v1493_v54 = vld [vmem:[%s3229_s4 + $0x1c8] sm:$0xff] }
  0x78   :  { %v610_v33 = vmin.f32 %v602_v53, %v609_v59  ;;  %v536_v32 = vmin.f32 %v534_v34, %v535_v49  ;;  %v634_v30 = vmul.f32 %v1484_v62, %v1730_v6  ;;  %v635_v9 = vmul.f32 %v1485_v63, %v1732_v7  ;;  %v1494_v48 = vld [vmem:[%s3229_s4 + $0x1d0] sm:$0xff]  ;;  %v1495_v1 = vld [vmem:[%s3229_s4 + $0x1d8] sm:$0xff]  ;;  %v1496_v59 = vld [vmem:[%s3229_s4 + $0x1e0] sm:$0xff] }
  0x79   :  { %v611_v38 = vmin.f32 %v604_v0, %v606_v4  ;;  %v2401_v35 = vadd.f32 %v2321_v56, %v2276_v2  ;;  %v2406_v39 = vmin.f32 %v2299_v43, %v418_v60  ;;  %v636_v34 = vmul.f32 %v1486_v5, %v1734_v8  ;;  %v1497_v5 = vld [vmem:[%s3229_s4 + $0x1e8] sm:$0xff] }
  0x7a   :  { %v612_v40 = vmin.f32 %v608_v29, %v610_v33  ;;  %v637_v44 = vmul.f32 %v1487_v20, %v1742_v11  ;;  %v638_v19 = vmul.f32 %v1488_v36, %v1744_v12  ;;  %v639_v45 = vmul.f32 %v1489_v61, %v1746_v13  ;;  %v1498_v29 = vld [vmem:[%s3229_s4 + $0x1f0] sm:$0xff]  ;;  %v1499_v33 = vld [vmem:[%s3229_s4 + $0x1f8] sm:$0xff] }
  0x7b   :  { %v640_v50 = vmul.f32 %v1490_v31, %v1750_v15  ;;  %v2413_v28 = vmin.f32 %v455_v25, %v456_v55  ;;  %v577_v2 = vmin.f32 %v575_v57, %v576_v26  ;;  %v641_v51 = vmul.f32 %v1491_v46, %v1752_v16 }
  0x7c   :  { %v613_v56 = vmin.f32 %v611_v38, %v612_v40  ;;  %v499_v49 = vrot.slane %v498_v3, 1  ;;  %v537_v43 = vrot.slane %v536_v32, 1  ;;  %v642_v60 = vsel %vm75_vm0, %v634_v30, inf }
  0x7d   :  { %v643_v41 = vsel %vm75_vm0, %v635_v9, inf  ;;  %v644_v47 = vsel %vm75_vm0, %v636_v34, inf  ;;  %v645_v52 = vsel %vm75_vm0, %v637_v44, inf  ;;  %v646_v25 = vsel %vm75_vm0, %v638_v19, inf }
  0x7e   :  { %v614_v37 = vrot.slane %v613_v56, 4  ;;  %v647_v53 = vmin.f32 %v642_v60, %v646_v25  ;;  %v648_v55 = vsel %vm75_vm0, %v639_v45, inf  ;;  %v650_v57 = vsel %vm75_vm0, %v640_v50, inf }
  0x7f   :  { %v652_v58 = vsel %vm75_vm0, %v641_v51, inf  ;;  %v458_v62 = vmin.f32 %v2406_v39, %v2413_v28  ;;  %v578_v63 = vrot.slane %v577_v2, 2  ;;  %v649_v4 = vmin.f32 %v643_v41, %v648_v55  ;;  %v1501_v41 = vld [vmem:[%s3228_s3 + $0x200] sm:$0xff] }
  0x80   :  { %v615_v0 = vmin.f32 %v613_v56, %v614_v37  ;;  %v651_v20 = vmin.f32 %v644_v47, %v650_v57  ;;  %v653_v26 = vmin.f32 %v645_v52, %v652_v58  ;;  %v672_v36 = vmul.f32 %v1492_v42, %v1748_v14  ;;  %v1503_v42 = vld [vmem:[%s3228_s3 + $0x210] sm:$0xff] }
  0x81   :  { %v673_v61 = vmul.f32 %v1493_v54, %v1754_v17  ;;  %v2454_v31 = vmin.f32 %v498_v3, %v499_v49  ;;  %v2456_v38 = vmin.f32 %v536_v32, %v537_v43  ;;  %v674_v30 = vmul.f32 %v1494_v48, %v1756_v18  ;;  %v1504_v54 = vld [vmem:[%s3228_s3 + $0x218] sm:$0xff] }
  0x82   :  { %v616_v46 = vrot.slane %v615_v0, 2  ;;  %v654_v9 = vmin.f32 %v647_v53, %v649_v4  ;;  %v675_v39 = vmul.f32 %v1495_v1, %v1764_v21  ;;  %v676_v40 = vmul.f32 %v1496_v59, %v1766_v22  ;;  %v1505_v53 = vld [vmem:[%s3228_s3 + $0x220] sm:$0xff] }
  0x83   :  { %v677_v34 = vmul.f32 %v1497_v5, %v1768_v23  ;;  %v655_v44 = vmin.f32 %v651_v20, %v653_v26  ;;  %v678_v19 = vmul.f32 %v1498_v29, %v1770_v24  ;;  %v679_v3 = vmul.f32 %v1499_v33, %v1778_v27 }
  0x84   :  { %v680_v32 = vsel %vm75_vm0, %v672_v36, inf  ;;  %v541_v45 = vstv %s2416_s19  ;;  %v579_v50 = vmin.f32 %v577_v2, %v578_v63  ;;  %v681_v28 = vsel %vm75_vm0, %v673_v61, inf  ;;  %v1502_v2 = vld [vmem:[%s3228_s3 + $0x208] sm:$0xff] }
  0x85   :  { %v682_v56 = vsel %vm75_vm0, %v674_v30, inf  ;;  %v683_v51 = vsel %vm75_vm0, %v675_v39, inf  ;;  %v684_v49 = vsel %vm75_vm0, %v676_v40, inf  ;;  %v686_v43 = vsel %vm75_vm0, %v677_v34, inf  ;;  %v1506_v63 = vld [vmem:[%s3228_s3 + $0x228] sm:$0xff] }
  0x86   :  { %v688_v60 = vsel %vm75_vm0, %v678_v19, inf  ;;  %v617_v37 = vmin.f32 %v615_v0, %v616_v46  ;;  %v685_v47 = vmin.f32 %v680_v32, %v684_v49  ;;  %v687_v52 = vmin.f32 %v681_v28, %v686_v43  ;;  %v1507_v0 = vld [vmem:[%s3228_s3 + $0x230] sm:$0xff]  ;;  %v1509_v19 = vld [vmem:[%s3229_s4 + $0x200] sm:$0xff] }
  0x87   :  { %v689_v25 = vmin.f32 %v682_v56, %v688_v60  ;;  %v461_v55 = vmul.f32 %v460_v10, %v458_v62  ;;  %v539_v57 = vmin.f32 %v2454_v31, %v2456_v38  ;;  %v656_v58 = vmin.f32 %v654_v9, %v655_v44  ;;  %v1508_v10 = vld [vmem:[%s3228_s3 + $0x238] sm:$0xff] }
  0x88   :  { %v690_v48 = vsel %vm75_vm0, %v679_v3, inf  ;;  %v692_v1 = vmin.f32 %v685_v47, %v687_v52  ;;  %v715_v62 = vmul.f32 %v1501_v41, %v1730_v6  ;;  %v716_v59 = vmul.f32 %v1502_v2, %v1732_v7  ;;  %v1510_v3 = vld [vmem:[%s3229_s4 + $0x208] sm:$0xff]  ;;  %v1512_v2 = vld [vmem:[%s3229_s4 + $0x218] sm:$0xff]  ;;  %v1513_v47 = vld [vmem:[%s3229_s4 + $0x220] sm:$0xff] }
  0x89   :  { %v691_v4 = vmin.f32 %v683_v51, %v690_v48  ;;  %v580_v5 = vrot.slane %v579_v50, 1  ;;  %v717_v20 = vmul.f32 %v1503_v42, %v1734_v8  ;;  %v718_v26 = vmul.f32 %v1504_v54, %v1742_v11  ;;  %v1511_v51 = vld [vmem:[%s3229_s4 + $0x210] sm:$0xff]  ;;  %v1514_v52 = vld [vmem:[%s3229_s4 + $0x228] sm:$0xff] }
  0x8a   :  { %v719_v29 = vmul.f32 %v1505_v53, %v1744_v12  ;;  %v618_v33 = vrot.slane %v617_v37, 1  ;;  %v720_v61 = vmul.f32 %v1506_v63, %v1746_v13  ;;  %v721_v31 = vmul.f32 %v1507_v0, %v1750_v15 }
  0x8b   :  { %v693_v36 = vmin.f32 %v689_v25, %v691_v4  ;;  %v462_v38 = vadd.f32 %v461_v55, %v2401_v35  ;;  %v622_v46 = vstv %s2462_s11  ;;  %v657_v30 = vrot.slane %v656_v58, 4  ;;  %s2813_s11 = sld [smem:[#allocation3 + $0x9]] }
  0x8c   :  { %v722_v9 = vmul.f32 %v1508_v10, %v1752_v16  ;;  %v723_v40 = vsel %vm75_vm0, %v715_v62, inf  ;;  %v724_v34 = vsel %vm75_vm0, %v716_v59, inf  ;;  %v725_v44 = vsel %vm75_vm0, %v717_v20, inf }
  0x8d   :  { %v694_v39 = vmin.f32 %v692_v1, %v693_v36  ;;  %v726_v35 = vsel %vm75_vm0, %v718_v26, inf  ;;  %v727_v32 = vsel %vm75_vm0, %v719_v29, inf  ;;  %v729_v28 = vsel %vm75_vm0, %v720_v61, inf }
  0x8e   :  { %v731_v56 = vsel %vm75_vm0, %v721_v31, inf  ;;  %v542_v49 = vmul.f32 %v541_v45, %v539_v57  ;;  %v581_v43 = vmin.f32 %v579_v50, %v580_v5  ;;  %v619_v60 = vmin.f32 %v617_v37, %v618_v33  ;;  %v1515_v45 = vld [vmem:[%s3229_s4 + $0x230] sm:$0xff]  ;;  %v1516_v50 = vld [vmem:[%s3229_s4 + $0x238] sm:$0xff] }
  0x8f   :  { %v695_v41 = vrot.slane %v694_v39, 4  ;;  %v658_v25 = vmin.f32 %v656_v58, %v657_v30  ;;  %v733_v42 = vsel %vm75_vm0, %v722_v9, inf  ;;  %v753_v37 = vmul.f32 %v1509_v19, %v1748_v14 }
  0x90   :  { %v754_v54 = vmul.f32 %v1510_v3, %v1754_v17  ;;  %v728_v53 = vmin.f32 %v723_v40, %v727_v32  ;;  %v730_v55 = vmin.f32 %v724_v34, %v729_v28  ;;  %v732_v57 = vmin.f32 %v725_v44, %v731_v56  ;;  %v1519_v40 = vld [vmem:[%s3228_s3 + $0x248] sm:$0xff]  ;;  %v1520_v34 = vld [vmem:[%s3228_s3 + $0x250] sm:$0xff]  ;;  %v1522_v32 = vld [vmem:[%s3228_s3 + $0x260] sm:$0xff] }
  0x91   :  { %v734_v48 = vmin.f32 %v726_v35, %v733_v42  ;;  %v755_v58 = vmul.f32 %v1511_v51, %v1756_v18  ;;  %v756_v63 = vmul.f32 %v1512_v2, %v1764_v21  ;;  %v757_v0 = vmul.f32 %v1513_v47, %v1766_v22  ;;  %v1523_v28 = vld [vmem:[%s3228_s3 + $0x268] sm:$0xff]  ;;  %v1524_v56 = vld [vmem:[%s3228_s3 + $0x270] sm:$0xff]  ;;  %v1525_v2 = vld [vmem:[%s3228_s3 + $0x278] sm:$0xff] }
  0x92   :  { %v758_v4 = vmul.f32 %v1514_v52, %v1768_v23  ;;  %v620_v1 = vmin.f32 %v581_v43, %v619_v60  ;;  %v696_v10 = vmin.f32 %v694_v39, %v695_v41  ;;  %v759_v62 = vmul.f32 %v1515_v45, %v1770_v24  ;;  %v1518_v39 = vld [vmem:[%s3228_s3 + $0x240] sm:$0xff]  ;;  %v1521_v41 = vld [vmem:[%s3228_s3 + $0x258] sm:$0xff] }
  0x93   :  { %v760_v59 = vmul.f32 %v1516_v50, %v1778_v27  ;;  %v761_v5 = vsel %vm75_vm0, %v753_v37, inf  ;;  %v762_v20 = vsel %vm75_vm0, %v754_v54, inf  ;;  %v763_v26 = vsel %vm75_vm0, %v755_v58, inf }
  0x94   :  { %v764_v29 = vsel %vm75_vm0, %v756_v63, inf  ;;  %v735_v33 = vmin.f32 %v728_v53, %v730_v55  ;;  %v736_v36 = vmin.f32 %v732_v57, %v734_v48  ;;  %v765_v61 = vsel %vm75_vm0, %v757_v0, inf }
  0x95   :  { %v767_v31 = vsel %vm75_vm0, %v758_v4, inf  ;;  %v769_v30 = vsel %vm75_vm0, %v759_v62, inf  ;;  %v771_v9 = vsel %vm75_vm0, %v760_v59, inf  ;;  %v766_v44 = vmin.f32 %v761_v5, %v765_v61  ;;  %v1527_v62 = vld [vmem:[%s3229_s4 + $0x248] sm:$0xff]  ;;  %v1529_v61 = vld [vmem:[%s3229_s4 + $0x258] sm:$0xff] }
  0x96   :  { %v768_v19 = vmin.f32 %v762_v20, %v767_v31  ;;  %v770_v3 = vmin.f32 %v763_v26, %v769_v30  ;;  %v772_v35 = vmin.f32 %v764_v29, %v771_v9  ;;  %v543_v51 = vadd.f32 %v542_v49, %v462_v38  ;;  %v1528_v20 = vld [vmem:[%s3229_s4 + $0x250] sm:$0xff]  ;;  %v1530_v31 = vld [vmem:[%s3229_s4 + $0x260] sm:$0xff]  ;;  %v1531_v30 = vld [vmem:[%s3229_s4 + $0x268] sm:$0xff] }
  0x97   :  { %v623_v43 = vmul.f32 %v622_v46, %v620_v1  ;;  %v659_v60 = vrot.slane %v658_v25, 2  ;;  %v697_v47 = vrot.slane %v696_v10, 2  ;;  %v737_v52 = vmin.f32 %v735_v33, %v736_v36  ;;  %v1526_v1 = vld [vmem:[%s3229_s4 + $0x240] sm:$0xff] }
  0x98   :  { %v796_v42 = vmul.f32 %v1518_v39, %v1730_v6  ;;  %v797_v45 = vmul.f32 %v1519_v40, %v1732_v7  ;;  %v798_v50 = vmul.f32 %v1520_v34, %v1734_v8  ;;  %v800_v38 = vmul.f32 %v1522_v32, %v1744_v12  ;;  %v1532_v40 = vld [vmem:[%s3229_s4 + $0x270] sm:$0xff]  ;;  %v1533_v34 = vld [vmem:[%s3229_s4 + $0x278] sm:$0xff] }
  0x99   :  { %v801_v46 = vmul.f32 %v1523_v28, %v1746_v13  ;;  %v802_v49 = vmul.f32 %v1524_v56, %v1750_v15  ;;  %v773_v37 = vmin.f32 %v766_v44, %v768_v19  ;;  %v774_v54 = vmin.f32 %v770_v3, %v772_v35 }
  0x9a   :  { %v799_v53 = vmul.f32 %v1521_v41, %v1742_v11  ;;  %v803_v55 = vmul.f32 %v1525_v2, %v1752_v16  ;;  %v660_v57 = vmin.f32 %v658_v25, %v659_v60  ;;  %v703_v48 = vstv %s2553_s16 }
  0x9b   :  { %v698_v58 = vmin.f32 %v696_v10, %v697_v47  ;;  %v804_v63 = vsel %vm75_vm0, %v796_v42, inf  ;;  %v805_v0 = vsel %vm75_vm0, %v797_v45, inf  ;;  %v808_v4 = vsel %vm75_vm0, %v800_v38, inf }
  0x9c   :  { %v2605_v59 = vadd.f32 %v623_v43, %v543_v51  ;;  %v806_v25 = vsel %vm75_vm0, %v798_v50, inf  ;;  %v810_v10 = vsel %vm75_vm0, %v801_v46, inf  ;;  %v812_v5 = vsel %vm75_vm0, %v802_v49, inf  ;;  %v1535_v49 = vld [vmem:[%s3228_s3 + $0x280] sm:$0xff] }
  0x9d   :  { %v738_v26 = vrot.slane %v737_v52, 4  ;;  %v775_v29 = vmin.f32 %v773_v37, %v774_v54  ;;  %v807_v33 = vsel %vm75_vm0, %v799_v53, inf  ;;  %v814_v36 = vsel %vm75_vm0, %v803_v55, inf  ;;  %v1536_v55 = vld [vmem:[%s3228_s3 + $0x288] sm:$0xff] }
  0x9e   :  { %v809_v9 = vmin.f32 %v804_v63, %v808_v4  ;;  %v811_v39 = vmin.f32 %v805_v0, %v810_v10  ;;  %v834_v44 = vmul.f32 %v1526_v1, %v1748_v14  ;;  %v835_v19 = vmul.f32 %v1527_v62, %v1754_v17  ;;  %v1537_v62 = vld [vmem:[%s3228_s3 + $0x290] sm:$0xff]  ;;  %v1539_v10 = vld [vmem:[%s3228_s3 + $0x2a0] sm:$0xff] }
  0x9f   :  { %v661_v3 = vrot.slane %v660_v57, 1  ;;  %v699_v35 = vrot.slane %v698_v58, 1  ;;  %v813_v32 = vmin.f32 %v806_v25, %v812_v5  ;;  %v836_v28 = vmul.f32 %v1528_v20, %v1756_v18  ;;  %v1538_v25 = vld [vmem:[%s3228_s3 + $0x298] sm:$0xff] }
  0xa0   :  { %v815_v56 = vmin.f32 %v807_v33, %v814_v36  ;;  %v837_v51 = vmul.f32 %v1529_v61, %v1764_v21  ;;  %v838_v43 = vmul.f32 %v1530_v31, %v1766_v22  ;;  %v839_v60 = vmul.f32 %v1531_v30, %v1768_v23  ;;  %v1540_v33 = vld [vmem:[%s3228_s3 + $0x2a8] sm:$0xff]  ;;  %v1541_v36 = vld [vmem:[%s3228_s3 + $0x2b0] sm:$0xff] }
  0xa1   :  { %v739_v41 = vmin.f32 %v737_v52, %v738_v26  ;;  %v840_v2 = vmul.f32 %v1532_v40, %v1770_v24  ;;  %v841_v47 = vmul.f32 %v1533_v34, %v1778_v27  ;;  %v842_v42 = vsel %vm75_vm0, %v834_v44, inf }
  0xa2   :  { %v776_v45 = vrot.slane %v775_v29, 4  ;;  %v816_v50 = vmin.f32 %v809_v9, %v811_v39  ;;  %v843_v38 = vsel %vm75_vm0, %v835_v19, inf  ;;  %v844_v46 = vsel %vm75_vm0, %v836_v28, inf }
  0xa3   :  { %v845_v52 = vsel %vm75_vm0, %v837_v51, inf  ;;  %v846_v37 = vsel %vm75_vm0, %v838_v43, inf  ;;  %v848_v54 = vsel %vm75_vm0, %v839_v60, inf  ;;  %v850_v53 = vsel %vm75_vm0, %v840_v2, inf }
  0xa4   :  { %v817_v63 = vmin.f32 %v813_v32, %v815_v56  ;;  %v847_v0 = vmin.f32 %v842_v42, %v846_v37  ;;  %v849_v4 = vmin.f32 %v843_v38, %v848_v54  ;;  %v851_v1 = vmin.f32 %v844_v46, %v850_v53  ;;  %v1543_v42 = vld [vmem:[%s3229_s4 + $0x280] sm:$0xff] }
  0xa5   :  { %v2662_v5 = vmin.f32 %v660_v57, %v661_v3  ;;  %v2664_v20 = vmin.f32 %v698_v58, %v699_v35  ;;  %v852_v26 = vsel %vm75_vm0, %v841_v47, inf  ;;  %v877_v61 = vmul.f32 %v1535_v49, %v1730_v6  ;;  %v1542_v57 = vld [vmem:[%s3228_s3 + $0x2b8] sm:$0xff] }
  0xa6   :  { %v777_v31 = vmin.f32 %v775_v29, %v776_v45  ;;  %v853_v30 = vmin.f32 %v845_v52, %v852_v26  ;;  %v854_v9 = vmin.f32 %v847_v0, %v849_v4  ;;  %v878_v58 = vmul.f32 %v1536_v55, %v1732_v7  ;;  %v1544_v45 = vld [vmem:[%s3229_s4 + $0x288] sm:$0xff]  ;;  %v1545_v52 = vld [vmem:[%s3229_s4 + $0x290] sm:$0xff]  ;;  %v1547_v0 = vld [vmem:[%s3229_s4 + $0x2a0] sm:$0xff] }
  0xa7   :  { %v740_v39 = vrot.slane %v739_v41, 2  ;;  %v879_v40 = vmul.f32 %v1537_v62, %v1734_v8  ;;  %v880_v34 = vmul.f32 %v1538_v25, %v1742_v11  ;;  %v881_v44 = vmul.f32 %v1539_v10, %v1744_v12  ;;  %v1548_v4 = vld [vmem:[%s3229_s4 + $0x2a8] sm:$0xff]  ;;  %v1550_v25 = vld [vmem:[%s3229_s4 + $0x2b8] sm:$0xff] }
  0xa8   :  { %v818_v19 = vmin.f32 %v816_v50, %v817_v63  ;;  %v855_v3 = vmin.f32 %v851_v1, %v853_v30  ;;  %v882_v35 = vmul.f32 %v1540_v33, %v1746_v13  ;;  %v883_v29 = vmul.f32 %v1541_v36, %v1750_v15  ;;  %v1546_v63 = vld [vmem:[%s3229_s4 + $0x298] sm:$0xff] }
  0xa9   :  { %v784_v32 = vstv %s2636_s25  ;;  %v884_v28 = vmul.f32 %v1542_v57, %v1752_v16  ;;  %v885_v56 = vsel %vm75_vm0, %v877_v61, inf  ;;  %v886_v51 = vsel %vm75_vm0, %v878_v58, inf }
  0xaa   :  { %v701_v43 = vmin.f32 %v2662_v5, %v2664_v20  ;;  %v778_v60 = vrot.slane %v777_v31, 2  ;;  %v856_v2 = vmin.f32 %v854_v9, %v855_v3  ;;  %v887_v47 = vsel %vm75_vm0, %v879_v40, inf  ;;  %v1561_v5 = vld [vmem:[%s3229_s4 + $0x2c8] sm:$0xff] }
  0xab   :  { %v888_v50 = vsel %vm75_vm0, %v880_v34, inf  ;;  %v889_v38 = vsel %vm75_vm0, %v881_v44, inf  ;;  %v891_v46 = vsel %vm75_vm0, %v882_v35, inf  ;;  %v893_v49 = vsel %vm75_vm0, %v883_v29, inf }
  0xac   :  { %v741_v37 = vmin.f32 %v739_v41, %v740_v39  ;;  %v819_v54 = vrot.slane %v818_v19, 4  ;;  %v890_v53 = vmin.f32 %v885_v56, %v889_v38  ;;  %v892_v55 = vmin.f32 %v886_v51, %v891_v46  ;;  %v1549_v41 = vld [vmem:[%s3229_s4 + $0x2b0] sm:$0xff] }
  0xad   :  { %v894_v1 = vmin.f32 %v887_v47, %v893_v49  ;;  %v895_v62 = vsel %vm75_vm0, %v884_v28, inf  ;;  %v915_v10 = vmul.f32 %v1543_v42, %v1748_v14  ;;  %v916_v26 = vmul.f32 %v1544_v45, %v1754_v17  ;;  %v1553_v42 = vld [vmem:[%s3228_s3 + $0x2c8] sm:$0xff]  ;;  %v1555_v49 = vld [vmem:[%s3228_s3 + $0x2d8] sm:$0xff] }
  0xae   :  { %v779_v33 = vmin.f32 %v777_v31, %v778_v60  ;;  %v857_v36 = vrot.slane %v856_v2, 4  ;;  %v896_v61 = vmin.f32 %v888_v50, %v895_v62  ;;  %v897_v30 = vmin.f32 %v890_v53, %v892_v55 }
  0xaf   :  { %v917_v9 = vmul.f32 %v1545_v52, %v1756_v18  ;;  %v918_v57 = vmul.f32 %v1546_v63, %v1764_v21  ;;  %v919_v58 = vmul.f32 %v1547_v0, %v1766_v22  ;;  %v920_v39 = vmul.f32 %v1548_v4, %v1768_v23  ;;  %v1556_v63 = vld [vmem:[%s3228_s3 + $0x2e0] sm:$0xff]  ;;  %v1557_v0 = vld [vmem:[%s3228_s3 + $0x2e8] sm:$0xff]  ;;  %v1558_v4 = vld [vmem:[%s3228_s3 + $0x2f0] sm:$0xff] }
  0xb0   :  { %v820_v40 = vmin.f32 %v818_v19, %v819_v54  ;;  %v898_v34 = vmin.f32 %v894_v1, %v896_v61  ;;  %v921_v44 = vmul.f32 %v1549_v41, %v1770_v24  ;;  %v922_v3 = vmul.f32 %v1550_v25, %v1778_v27  ;;  %v1552_v19 = vld [vmem:[%s3228_s3 + $0x2c0] sm:$0xff]  ;;  %v1559_v41 = vld [vmem:[%s3228_s3 + $0x2f8] sm:$0xff] }
  0xb1   :  { %v923_v35 = vsel %vm75_vm0, %v915_v10, inf  ;;  %v924_v31 = vsel %vm75_vm0, %v916_v26, inf  ;;  %v925_v29 = vsel %vm75_vm0, %v917_v9, inf  ;;  %v926_v28 = vsel %vm75_vm0, %v918_v57, inf }
  0xb2   :  { %v858_v56 = vmin.f32 %v856_v2, %v857_v36  ;;  %v899_v51 = vmin.f32 %v897_v30, %v898_v34  ;;  %v927_v60 = vsel %vm75_vm0, %v919_v58, inf  ;;  %v929_v47 = vsel %vm75_vm0, %v920_v39, inf  ;;  %v1554_v2 = vld [vmem:[%s3228_s3 + $0x2d0] sm:$0xff] }
  0xb3   :  { %v928_v45 = vmin.f32 %v923_v35, %v927_v60  ;;  %v930_v50 = vmin.f32 %v924_v31, %v929_v47  ;;  %v931_v38 = vsel %vm75_vm0, %v921_v44, inf  ;;  %v933_v46 = vsel %vm75_vm0, %v922_v3, inf }
  0xb4   :  { %v742_v52 = vrot.slane %v741_v37, 1  ;;  %v780_v54 = vrot.slane %v779_v33, 1  ;;  %v932_v53 = vmin.f32 %v925_v29, %v931_v38  ;;  %v934_v55 = vmin.f32 %v926_v28, %v933_v46 }
  0xb5   :  { %v821_v1 = vrot.slane %v820_v40, 2  ;;  %v935_v62 = vmin.f32 %v928_v45, %v930_v50  ;;  %v958_v25 = vmul.f32 %v1552_v19, %v1730_v6  ;;  %v959_v10 = vmul.f32 %v1553_v42, %v1732_v7 }
  0xb6   :  { %v859_v26 = vrot.slane %v858_v56, 2  ;;  %v900_v36 = vrot.slane %v899_v51, 4  ;;  %v936_v61 = vmin.f32 %v932_v53, %v934_v55  ;;  %v960_v30 = vmul.f32 %v1554_v2, %v1734_v8  ;;  %v1564_v2 = vld [vmem:[%s3229_s4 + $0x2e0] sm:$0xff]  ;;  %v1567_v53 = vld [vmem:[%s3229_s4 + $0x2f8] sm:$0xff] }
  0xb7   :  { %v961_v9 = vmul.f32 %v1555_v49, %v1742_v11  ;;  %v962_v57 = vmul.f32 %v1556_v63, %v1744_v12  ;;  %v963_v58 = vmul.f32 %v1557_v0, %v1746_v13  ;;  %v964_v39 = vmul.f32 %v1558_v4, %v1750_v15  ;;  %v1565_v49 = vld [vmem:[%s3229_s4 + $0x2e8] sm:$0xff] }
  0xb8   :  { %v704_v34 = vmul.f32 %v703_v48, %v701_v43  ;;  %v743_v44 = vmin.f32 %v741_v37, %v742_v52  ;;  %v937_v3 = vmin.f32 %v935_v62, %v936_v61  ;;  %v965_v35 = vmul.f32 %v1559_v41, %v1752_v16  ;;  %v1560_v48 = vld [vmem:[%s3229_s4 + $0x2c0] sm:$0xff] }
  0xb9   :  { %v781_v31 = vmin.f32 %v779_v33, %v780_v54  ;;  %v822_v29 = vmin.f32 %v820_v40, %v821_v1  ;;  %v966_v28 = vsel %vm75_vm0, %v958_v25, inf  ;;  %v967_v60 = vsel %vm75_vm0, %v959_v10, inf  ;;  %v1562_v40 = vld [vmem:[%s3229_s4 + $0x2d0] sm:$0xff] }
  0xba   :  { %v860_v47 = vmin.f32 %v858_v56, %v859_v26  ;;  %v968_v19 = vsel %vm75_vm0, %v960_v30, inf  ;;  %v969_v42 = vsel %vm75_vm0, %v961_v9, inf  ;;  %v970_v45 = vsel %vm75_vm0, %v962_v57, inf }
  0xbb   :  { %v901_v20 = vmin.f32 %v899_v51, %v900_v36  ;;  %v972_v43 = vsel %vm75_vm0, %v963_v58, inf  ;;  %v974_v37 = vsel %vm75_vm0, %v964_v39, inf  ;;  %v976_v33 = vsel %vm75_vm0, %v965_v35, inf  ;;  %v1563_v51 = vld [vmem:[%s3229_s4 + $0x2d8] sm:$0xff] }
  0xbc   :  { %v2790_v56 = vadd.f32 %v704_v34, %v2605_v59  ;;  %v938_v50 = vrot.slane %v937_v3, 4  ;;  %v971_v38 = vmin.f32 %v966_v28, %v970_v45  ;;  %v973_v46 = vmin.f32 %v967_v60, %v972_v43  ;;  %v1566_v59 = vld [vmem:[%s3229_s4 + $0x2f0] sm:$0xff]  ;;  %v1569_v28 = vld [vmem:[%s3228_s3 + $0x300] sm:$0xff]  ;;  %v1570_v60 = vld [vmem:[%s3228_s3 + $0x308] sm:$0xff] }
  0xbd   :  { %v975_v52 = vmin.f32 %v968_v19, %v974_v37  ;;  %v977_v54 = vmin.f32 %v969_v42, %v976_v33  ;;  %v996_v55 = vmul.f32 %v1560_v48, %v1748_v14  ;;  %v997_v63 = vmul.f32 %v1561_v5, %v1754_v17  ;;  %v1571_v5 = vld [vmem:[%s3228_s3 + $0x310] sm:$0xff]  ;;  %v1572_v43 = vld [vmem:[%s3228_s3 + $0x318] sm:$0xff]  ;;  %v1573_v37 = vld [vmem:[%s3228_s3 + $0x320] sm:$0xff] }
  0xbe   :  { %v782_v0 = vmin.f32 %v743_v44, %v781_v31  ;;  %v823_v4 = vrot.slane %v822_v29, 1  ;;  %v861_v1 = vrot.slane %v860_v47, 1  ;;  %v998_v62 = vmul.f32 %v1562_v40, %v1756_v18 }
  0xbf   :  { %v902_v41 = vrot.slane %v901_v20, 2  ;;  %v999_v25 = vmul.f32 %v1563_v51, %v1764_v21  ;;  %v1000_v10 = vmul.f32 %v1564_v2, %v1766_v22  ;;  %v1001_v26 = vmul.f32 %v1565_v49, %v1768_v23 }
  0xc0   :  { %v939_v36 = vmin.f32 %v937_v3, %v938_v50  ;;  %v1002_v61 = vmul.f32 %v1566_v59, %v1770_v24  ;;  %v1003_v30 = vmul.f32 %v1567_v53, %v1778_v27  ;;  %v1004_v9 = vsel %vm75_vm0, %v996_v55, inf }
  0xc1   :  { %v978_v57 = vmin.f32 %v971_v38, %v973_v46  ;;  %v979_v58 = vmin.f32 %v975_v52, %v977_v54  ;;  %v1005_v39 = vsel %vm75_vm0, %v997_v63, inf  ;;  %v1006_v34 = vsel %vm75_vm0, %v998_v62, inf  ;;  %v1574_v38 = vld [vmem:[%s3228_s3 + $0x328] sm:$0xff]  ;;  %v1575_v46 = vld [vmem:[%s3228_s3 + $0x330] sm:$0xff] }
  0xc2   :  { %v1007_v44 = vsel %vm75_vm0, %v999_v25, inf  ;;  %v1008_v35 = vsel %vm75_vm0, %v1000_v10, inf  ;;  %v1010_v31 = vsel %vm75_vm0, %v1001_v26, inf  ;;  %v1012_v3 = vsel %vm75_vm0, %v1002_v61, inf  ;;  %v1577_v61 = vld [vmem:[%s3229_s4 + $0x300] sm:$0xff] }
  0xc3   :  { %v785_v19 = vmul.f32 %v784_v32, %v782_v0  ;;  %v1009_v42 = vmin.f32 %v1004_v9, %v1008_v35  ;;  %v1011_v45 = vmin.f32 %v1005_v39, %v1010_v31  ;;  %v1013_v48 = vmin.f32 %v1006_v34, %v1012_v3  ;;  %v1580_v31 = vld [vmem:[%s3229_s4 + $0x318] sm:$0xff]  ;;  %v1581_v3 = vld [vmem:[%s3229_s4 + $0x320] sm:$0xff] }
  0xc4   :  { %v2841_v33 = vmin.f32 %v822_v29, %v823_v4  ;;  %v2843_v40 = vmin.f32 %v860_v47, %v861_v1  ;;  %v940_v32 = vrot.slane %v939_v36, 2  ;;  %v1014_v50 = vsel %vm75_vm0, %v1003_v30, inf  ;;  %v1576_v29 = vld [vmem:[%s3228_s3 + $0x338] sm:$0xff] }
  0xc5   :  { %v2852_v51 = vmin.f32 %v901_v20, %v902_v41  ;;  %v1015_v2 = vmin.f32 %v1007_v44, %v1014_v50  ;;  %v1039_v47 = vmul.f32 %v1569_v28, %v1730_v6  ;;  %v1040_v49 = vmul.f32 %v1570_v60, %v1732_v7  ;;  %v1582_v28 = vld [vmem:[%s3229_s4 + $0x328] sm:$0xff] }
  0xc6   :  { %v980_v52 = vmin.f32 %v978_v57, %v979_v58  ;;  %v1041_v54 = vmul.f32 %v1571_v5, %v1734_v8  ;;  %v1042_v59 = vmul.f32 %v1572_v43, %v1742_v11  ;;  %v1043_v53 = vmul.f32 %v1573_v37, %v1744_v12  ;;  %v1579_v58 = vld [vmem:[%s3229_s4 + $0x310] sm:$0xff] }
  0xc7   :  { %v1016_v55 = vmin.f32 %v1009_v42, %v1011_v45  ;;  %v1017_v63 = vmin.f32 %v1013_v48, %v1015_v2  ;;  %v1044_v20 = vmul.f32 %v1574_v38, %v1746_v13  ;;  %v1045_v0 = vmul.f32 %v1575_v46, %v1750_v15  ;;  %v1583_v42 = vld [vmem:[%s3229_s4 + $0x330] sm:$0xff]  ;;  %v1584_v45 = vld [vmem:[%s3229_s4 + $0x338] sm:$0xff] }
  0xc8   :  { %v865_v4 = vstv %s2813_s11  ;;  %v2865_v1 = vmin.f32 %v939_v36, %v940_v32  ;;  %v1046_v62 = vmul.f32 %v1576_v29, %v1752_v16  ;;  %v2869_v41 = vadd.f32 %v785_v19, %v2790_v56  ;;  %v1578_v36 = vld [vmem:[%s3229_s4 + $0x308] sm:$0xff] }
  0xc9   :  { %v1047_v25 = vsel %vm75_vm0, %v1039_v47, inf  ;;  %v1048_v10 = vsel %vm75_vm0, %v1040_v49, inf  ;;  %v1049_v26 = vsel %vm75_vm0, %v1041_v54, inf  ;;  %v1050_v30 = vsel %vm75_vm0, %v1042_v59, inf }
  0xca   :  { %v1051_v9 = vsel %vm75_vm0, %v1043_v53, inf  ;;  %v1053_v56 = vsel %vm75_vm0, %v1044_v20, inf  ;;  %v1055_v57 = vsel %vm75_vm0, %v1045_v0, inf  ;;  %v863_v39 = vmin.f32 %v2841_v33, %v2843_v40 }
  0xcb   :  { %v904_v34 = vrot.slane %v2852_v51, 1  ;;  %v981_v44 = vrot.slane %v980_v52, 4  ;;  %v1018_v35 = vmin.f32 %v1016_v55, %v1017_v63  ;;  %v942_v60 = vrot.slane %v2865_v1, 1 }
  0xcc   :  { %v1057_v19 = vsel %vm75_vm0, %v1046_v62, inf  ;;  %v1077_v48 = vmul.f32 %v1577_v61, %v1748_v14  ;;  %v1078_v5 = vmul.f32 %v1578_v36, %v1754_v17  ;;  %v1052_v43 = vmin.f32 %v1047_v25, %v1051_v9  ;;  %v1587_v25 = vld [vmem:[%s3228_s3 + $0x348] sm:$0xff]  ;;  %v1589_v9 = vld [vmem:[%s3228_s3 + $0x358] sm:$0xff] }
  0xcd   :  { %v1054_v37 = vmin.f32 %v1048_v10, %v1053_v56  ;;  %v1056_v33 = vmin.f32 %v1049_v26, %v1055_v57  ;;  %v1058_v40 = vmin.f32 %v1050_v30, %v1057_v19  ;;  %v1079_v32 = vmul.f32 %v1579_v58, %v1756_v18  ;;  %v1588_v30 = vld [vmem:[%s3228_s3 + $0x350] sm:$0xff] }
  0xce   :  { %v1080_v50 = vmul.f32 %v1580_v31, %v1764_v21  ;;  %v1081_v38 = vmul.f32 %v1581_v3, %v1766_v22  ;;  %v1082_v46 = vmul.f32 %v1582_v28, %v1768_v23  ;;  %v982_v2 = vmin.f32 %v980_v52, %v981_v44  ;;  %v1586_v52 = vld [vmem:[%s3228_s3 + $0x340] sm:$0xff]  ;;  %v1593_v3 = vld [vmem:[%s3228_s3 + $0x378] sm:$0xff] }
  0xcf   :  { %v1019_v29 = vrot.slane %v1018_v35, 4  ;;  %v1083_v47 = vmul.f32 %v1583_v42, %v1770_v24  ;;  %v1084_v49 = vmul.f32 %v1584_v45, %v1778_v27  ;;  %v1085_v54 = vsel %vm75_vm0, %v1077_v48, inf }
  0xd0   :  { %v1086_v59 = vsel %vm75_vm0, %v1078_v5, inf  ;;  %v1087_v53 = vsel %vm75_vm0, %v1079_v32, inf  ;;  %v1088_v55 = vsel %vm75_vm0, %v1080_v50, inf  ;;  %v1059_v63 = vmin.f32 %v1052_v43, %v1054_v37 }
  0xd1   :  { %v1060_v20 = vmin.f32 %v1056_v33, %v1058_v40  ;;  %v1089_v0 = vsel %vm75_vm0, %v1081_v38, inf  ;;  %v1091_v62 = vsel %vm75_vm0, %v1082_v46, inf  ;;  %v866_v10 = vmul.f32 %v865_v4, %v863_v39  ;;  %v1591_v39 = vld [vmem:[%s3228_s3 + $0x368] sm:$0xff] }
  0xd2   :  { %v905_v26 = vmin.f32 %v2852_v51, %v904_v34  ;;  %v1093_v61 = vsel %vm75_vm0, %v1083_v47, inf  ;;  %v1095_v36 = vsel %vm75_vm0, %v1084_v49, inf  ;;  %v1090_v56 = vmin.f32 %v1085_v54, %v1089_v0  ;;  %v1590_v51 = vld [vmem:[%s3228_s3 + $0x360] sm:$0xff]  ;;  %v1592_v34 = vld [vmem:[%s3228_s3 + $0x370] sm:$0xff] }
  0xd3   :  { %v1092_v57 = vmin.f32 %v1086_v59, %v1091_v62  ;;  %v1094_v4 = vmin.f32 %v1087_v53, %v1093_v61  ;;  %v1096_v58 = vmin.f32 %v1088_v55, %v1095_v36  ;;  %v943_v44 = vmin.f32 %v2865_v1, %v942_v60  ;;  %v1594_v59 = vld [vmem:[%s3229_s4 + $0x340] sm:$0xff]  ;;  %v1596_v0 = vld [vmem:[%s3229_s4 + $0x350] sm:$0xff]  ;;  %v1599_v36 = vld [vmem:[%s3229_s4 + $0x368] sm:$0xff] }
  0xd4   :  { %v983_v31 = vrot.slane %v982_v2, 2  ;;  %v1120_v28 = vmul.f32 %v1586_v52, %v1730_v6  ;;  %v1121_v19 = vmul.f32 %v1587_v25, %v1732_v7  ;;  %v946_v42 = vstv %s2909_s17  ;;  %v1598_v61 = vld [vmem:[%s3229_s4 + $0x360] sm:$0xff] }
  0xd5   :  { %v1020_v45 = vmin.f32 %v1018_v35, %v1019_v29  ;;  %v1061_v48 = vmin.f32 %v1059_v63, %v1060_v20  ;;  %v1122_v5 = vmul.f32 %v1588_v30, %v1734_v8  ;;  %v1123_v43 = vmul.f32 %v1589_v9, %v1742_v11 }
  0xd6   :  { %v1124_v37 = vmul.f32 %v1590_v51, %v1744_v12  ;;  %v1125_v1 = vmul.f32 %v1591_v39, %v1746_v13  ;;  %v1126_v60 = vmul.f32 %v1592_v34, %v1750_v15  ;;  %v2962_v33 = vadd.f32 %v866_v10, %v2869_v41 }
  0xd7   :  { %v1097_v40 = vmin.f32 %v1090_v56, %v1092_v57  ;;  %v1098_v32 = vmin.f32 %v1094_v4, %v1096_v58  ;;  %v1127_v50 = vmul.f32 %v1593_v3, %v1752_v16  ;;  %v944_v35 = vmin.f32 %v905_v26, %v943_v44  ;;  %v1597_v26 = vld [vmem:[%s3229_s4 + $0x358] sm:$0xff]  ;;  %v1600_v56 = vld [vmem:[%s3229_s4 + $0x370] sm:$0xff] }
  0xd8   :  { %v2965_v38 = vmin.f32 %v982_v2, %v983_v31  ;;  %v1128_v46 = vsel %vm75_vm0, %v1120_v28, inf  ;;  %v1129_v29 = vsel %vm75_vm0, %v1121_v19, inf  ;;  %v1021_v47 = vrot.slane %v1020_v45, 2  ;;  %v1595_v2 = vld [vmem:[%s3229_s4 + $0x348] sm:$0xff]  ;;  %v1601_v57 = vld [vmem:[%s3229_s4 + $0x378] sm:$0xff] }
  0xd9   :  { %v1130_v49 = vsel %vm75_vm0, %v1122_v5, inf  ;;  %v1131_v54 = vsel %vm75_vm0, %v1123_v43, inf  ;;  %v1132_v41 = vsel %vm75_vm0, %v1124_v37, inf  ;;  %v1062_v53 = vrot.slane %v1061_v48, 4 }
  0xda   :  { %v1134_v55 = vsel %vm75_vm0, %v1125_v1, inf  ;;  %v1136_v63 = vsel %vm75_vm0, %v1126_v60, inf  ;;  %v1138_v20 = vsel %vm75_vm0, %v1127_v50, inf  ;;  %v1027_v62 = vstv %s2938_s22  ;;  %s1636_s22 = sld [smem:[#allocation3 + $0xf]] }
  0xdb   :  { %v1099_v52 = vmin.f32 %v1097_v40, %v1098_v32  ;;  %v1133_v25 = vmin.f32 %v1128_v46, %v1132_v41  ;;  %v1135_v10 = vmin.f32 %v1129_v29, %v1134_v55  ;;  %v1137_v30 = vmin.f32 %v1130_v49, %v1136_v63  ;;  %v1604_v29 = vld [vmem:[%s3228_s3 + $0x388] sm:$0xff] }
  0xdc   :  { %v1139_v9 = vmin.f32 %v1131_v54, %v1138_v20  ;;  %v1158_v4 = vmul.f32 %v1594_v59, %v1748_v14  ;;  %v1159_v58 = vmul.f32 %v1595_v2, %v1754_v17  ;;  %v3002_v51 = vmul.f32 %v946_v42, %v944_v35  ;;  %v1605_v59 = vld [vmem:[%s3228_s3 + $0x390] sm:$0xff]  ;;  %v1606_v2 = vld [vmem:[%s3228_s3 + $0x398] sm:$0xff] }
  0xdd   :  { %v985_v39 = vrot.slane %v2965_v38, 1  ;;  %v1022_v34 = vmin.f32 %v1020_v45, %v1021_v47  ;;  %v1160_v44 = vmul.f32 %v1596_v0, %v1756_v18  ;;  %v1063_v31 = vmin.f32 %v1061_v48, %v1062_v53  ;;  %v1603_v48 = vld [vmem:[%s3228_s3 + $0x380] sm:$0xff]  ;;  %v1608_v0 = vld [vmem:[%s3228_s3 + $0x3a8] sm:$0xff] }
  0xde   :  { %v1161_v3 = vmul.f32 %v1597_v26, %v1764_v21  ;;  %v1162_v28 = vmul.f32 %v1598_v61, %v1766_v22  ;;  %v1163_v19 = vmul.f32 %v1599_v36, %v1768_v23  ;;  %v1100_v5 = vrot.slane %v1099_v52, 4  ;;  %v1607_v53 = vld [vmem:[%s3228_s3 + $0x3a0] sm:$0xff] }
  0xdf   :  { %v1164_v43 = vmul.f32 %v1600_v56, %v1770_v24  ;;  %v1165_v37 = vmul.f32 %v1601_v57, %v1778_v27  ;;  %v1166_v42 = vsel %vm75_vm0, %v1158_v4, inf  ;;  %v1140_v1 = vmin.f32 %v1133_v25, %v1135_v10  ;;  %v1609_v25 = vld [vmem:[%s3228_s3 + $0x3b0] sm:$0xff] }
  0xe0   :  { %v1141_v60 = vmin.f32 %v1137_v30, %v1139_v9  ;;  %v1167_v45 = vsel %vm75_vm0, %v1159_v58, inf  ;;  %v1168_v40 = vsel %vm75_vm0, %v1160_v44, inf  ;;  %v1169_v32 = vsel %vm75_vm0, %v1161_v3, inf  ;;  %v1610_v30 = vld [vmem:[%s3228_s3 + $0x3b8] sm:$0xff] }
  0xe1   :  { %v1170_v50 = vsel %vm75_vm0, %v1162_v28, inf  ;;  %v1172_v35 = vsel %vm75_vm0, %v1163_v19, inf  ;;  %v1174_v46 = vsel %vm75_vm0, %v1164_v43, inf  ;;  %v1064_v47 = vrot.slane %v1063_v31, 2 }
  0xe2   :  { %v1171_v49 = vmin.f32 %v1166_v42, %v1170_v50  ;;  %v1173_v54 = vmin.f32 %v1167_v45, %v1172_v35  ;;  %v1175_v41 = vmin.f32 %v1168_v40, %v1174_v46  ;;  %v1023_v55 = vrot.slane %v1022_v34, 1 }
  0xe3   :  { %v1101_v63 = vmin.f32 %v1099_v52, %v1100_v5  ;;  %v1176_v20 = vsel %vm75_vm0, %v1165_v37, inf  ;;  %v1201_v10 = vmul.f32 %v1603_v48, %v1730_v6  ;;  %v1142_v26 = vmin.f32 %v1140_v1, %v1141_v60 }
  0xe4   :  { %v1177_v61 = vmin.f32 %v1169_v32, %v1176_v20  ;;  %v1178_v36 = vmin.f32 %v1171_v49, %v1173_v54  ;;  %v1202_v52 = vmul.f32 %v1604_v29, %v1732_v7  ;;  %v3046_v9 = vmin.f32 %v2965_v38, %v985_v39  ;;  %v1613_v32 = vld [vmem:[%s3229_s4 + $0x390] sm:$0xff]  ;;  %v1615_v49 = vld [vmem:[%s3229_s4 + $0x3a0] sm:$0xff]  ;;  %v1616_v54 = vld [vmem:[%s3229_s4 + $0x3a8] sm:$0xff] }
  0xe5   :  { %v1203_v56 = vmul.f32 %v1605_v59, %v1734_v8  ;;  %v1204_v57 = vmul.f32 %v1606_v2, %v1742_v11  ;;  %v1205_v4 = vmul.f32 %v1607_v53, %v1744_v12  ;;  %v3051_v58 = vmin.f32 %v1063_v31, %v1064_v47  ;;  %v1611_v31 = vld [vmem:[%s3229_s4 + $0x380] sm:$0xff]  ;;  %v1614_v47 = vld [vmem:[%s3229_s4 + $0x398] sm:$0xff]  ;;  %v1617_v2 = vld [vmem:[%s3229_s4 + $0x3b0] sm:$0xff] }
  0xe6   :  { %v1179_v44 = vmin.f32 %v1175_v41, %v1177_v61  ;;  %v1206_v3 = vmul.f32 %v1608_v0, %v1746_v13  ;;  %v1207_v28 = vmul.f32 %v1609_v25, %v1750_v15  ;;  %v3055_v19 = vmin.f32 %v1022_v34, %v1023_v55  ;;  %v1612_v34 = vld [vmem:[%s3229_s4 + $0x388] sm:$0xff]  ;;  %v1618_v53 = vld [vmem:[%s3229_s4 + $0x3b8] sm:$0xff] }
  0xe7   :  { %v1208_v5 = vmul.f32 %v1610_v30, %v1752_v16  ;;  %v1209_v38 = vsel %vm75_vm0, %v1201_v10, inf  ;;  %v1210_v39 = vsel %vm75_vm0, %v1202_v52, inf  ;;  %v1102_v43 = vrot.slane %v1101_v63, 2 }
  0xe8   :  { %v1143_v37 = vrot.slane %v1142_v26, 4  ;;  %v1180_v42 = vmin.f32 %v1178_v36, %v1179_v44  ;;  %v1211_v1 = vsel %vm75_vm0, %v1203_v56, inf  ;;  %v1212_v60 = vsel %vm75_vm0, %v1204_v57, inf }
  0xe9   :  { %v1213_v45 = vsel %vm75_vm0, %v1205_v4, inf  ;;  %v1215_v40 = vsel %vm75_vm0, %v1206_v3, inf  ;;  %v1217_v48 = vsel %vm75_vm0, %v1207_v28, inf  ;;  %v1066_v50 = vrot.slane %v3051_v58, 1 }
  0xea   :  { %v1181_v35 = vrot.slane %v1180_v42, 4  ;;  %v1214_v46 = vmin.f32 %v1209_v38, %v1213_v45  ;;  %v1216_v29 = vmin.f32 %v1210_v39, %v1215_v40  ;;  %v1218_v41 = vmin.f32 %v1211_v1, %v1217_v48  ;;  %v1621_v1 = vld [vmem:[%s3228_s3 + $0x3c8] sm:$0xff]  ;;  %v1622_v40 = vld [vmem:[%s3228_s3 + $0x3d0] sm:$0xff]  ;;  %v1623_v48 = vld [vmem:[%s3228_s3 + $0x3d8] sm:$0xff] }
  0xeb   :  { %v1219_v59 = vsel %vm75_vm0, %v1208_v5, inf  ;;  %v1239_v55 = vmul.f32 %v1611_v31, %v1748_v14  ;;  %v1240_v20 = vmul.f32 %v1612_v34, %v1754_v17  ;;  %v1103_v0 = vmin.f32 %v1101_v63, %v1102_v43 }
  0xec   :  { %v1144_v25 = vmin.f32 %v1142_v26, %v1143_v37  ;;  %v1220_v10 = vmin.f32 %v1212_v60, %v1219_v59  ;;  %v1221_v61 = vmin.f32 %v1214_v46, %v1216_v29  ;;  %v1241_v36 = vmul.f32 %v1613_v32, %v1756_v18 }
  0xed   :  { %v1242_v30 = vmul.f32 %v1614_v47, %v1764_v21  ;;  %v1243_v52 = vmul.f32 %v1615_v49, %v1766_v22  ;;  %v1244_v56 = vmul.f32 %v1616_v54, %v1768_v23  ;;  %v1182_v57 = vmin.f32 %v1180_v42, %v1181_v35  ;;  %v1620_v42 = vld [vmem:[%s3228_s3 + $0x3c0] sm:$0xff]  ;;  %v1625_v49 = vld [vmem:[%s3228_s3 + $0x3e8] sm:$0xff]  ;;  %v1626_v54 = vld [vmem:[%s3228_s3 + $0x3f0] sm:$0xff] }
  0xee   :  { %v1222_v4 = vmin.f32 %v1218_v41, %v1220_v10  ;;  %v1245_v44 = vmul.f32 %v1617_v2, %v1770_v24  ;;  %v1246_v3 = vmul.f32 %v1618_v53, %v1778_v27  ;;  %v1247_v28 = vsel %vm75_vm0, %v1239_v55, inf  ;;  %v1624_v47 = vld [vmem:[%s3228_s3 + $0x3e0] sm:$0xff]  ;;  %v1627_v2 = vld [vmem:[%s3228_s3 + $0x3f8] sm:$0xff] }
  0xef   :  { %v1248_v63 = vsel %vm75_vm0, %v1240_v20, inf  ;;  %v1249_v26 = vsel %vm75_vm0, %v1241_v36, inf  ;;  %v1250_v5 = vsel %vm75_vm0, %v1242_v30, inf  ;;  %v1104_v38 = vrot.slane %v1103_v0, 1 }
  0xf0   :  { %v1223_v39 = vmin.f32 %v1221_v61, %v1222_v4  ;;  %v1251_v43 = vsel %vm75_vm0, %v1243_v52, inf  ;;  %v1253_v37 = vsel %vm75_vm0, %v1244_v56, inf  ;;  %v1255_v60 = vsel %vm75_vm0, %v1245_v44, inf }
  0xf1   :  { %v1252_v31 = vmin.f32 %v1247_v28, %v1251_v43  ;;  %v1254_v34 = vmin.f32 %v1248_v63, %v1253_v37  ;;  %v1257_v45 = vsel %vm75_vm0, %v1246_v3, inf  ;;  %v1145_v32 = vrot.slane %v1144_v25, 2 }
  0xf2   :  { %v1224_v35 = vrot.slane %v1223_v39, 4  ;;  %v1256_v46 = vmin.f32 %v1249_v26, %v1255_v60  ;;  %v1258_v29 = vmin.f32 %v1250_v5, %v1257_v45  ;;  %v1183_v41 = vrot.slane %v1182_v57, 2  ;;  %v1630_v5 = vld [vmem:[%s3229_s4 + $0x3d0] sm:$0xff] }
  0xf3   :  { %v1259_v59 = vmin.f32 %v1252_v31, %v1254_v34  ;;  %v1282_v53 = vmul.f32 %v1620_v42, %v1730_v6  ;;  %v1283_v55 = vmul.f32 %v1621_v1, %v1732_v7  ;;  %v1025_v20 = vmin.f32 %v3046_v9, %v3055_v19  ;;  %v1631_v42 = vld [vmem:[%s3229_s4 + $0x3d8] sm:$0xff]  ;;  %v1632_v1 = vld [vmem:[%s3229_s4 + $0x3e0] sm:$0xff]  ;;  %v1633_v31 = vld [vmem:[%s3229_s4 + $0x3e8] sm:$0xff] }
  0xf4   :  { %v3136_v10 = vmin.f32 %v3051_v58, %v1066_v50  ;;  %v1260_v61 = vmin.f32 %v1256_v46, %v1258_v29  ;;  %v1284_v36 = vmul.f32 %v1622_v40, %v1734_v8  ;;  %v1285_v30 = vmul.f32 %v1623_v48, %v1742_v11  ;;  %v1634_v45 = vld [vmem:[%s3229_s4 + $0x3f0] sm:$0xff]  ;;  %v1635_v40 = vld [vmem:[%s3229_s4 + $0x3f8] sm:$0xff] }
  0xf5   :  { %v1286_v52 = vmul.f32 %v1624_v47, %v1744_v12  ;;  %v1287_v56 = vmul.f32 %v1625_v49, %v1746_v13  ;;  %v1288_v4 = vmul.f32 %v1626_v54, %v1750_v15  ;;  %v3143_v6 = vmin.f32 %v1144_v25, %v1145_v32  ;;  %v1628_v25 = vld [vmem:[%s3229_s4 + $0x3c0] sm:$0xff] }
  0xf6   :  { %v1225_v7 = vmin.f32 %v1223_v39, %v1224_v35  ;;  %v1261_v44 = vmin.f32 %v1259_v59, %v1260_v61  ;;  %v1289_v3 = vmul.f32 %v1627_v2, %v1752_v16  ;;  %v3146_v28 = vmin.f32 %v1103_v0, %v1104_v38  ;;  %v1629_v16 = vld [vmem:[%s3229_s4 + $0x3c8] sm:$0xff]  ;;  %s1602_s4 = sld [smem:[#allocation3 + $0xd]] }
  0xf7   :  { %v1184_v58 = vmin.f32 %v1182_v57, %v1183_v41  ;;  %v1290_v50 = vsel %vm75_vm0, %v1282_v53, inf  ;;  %v1291_v8 = vsel %vm75_vm0, %v1283_v55, inf  ;;  %v1292_v12 = vsel %vm75_vm0, %v1284_v36, inf }
  0xf8   :  { %v1262_v11 = vrot.slane %v1261_v44, 4  ;;  %v1293_v13 = vsel %vm75_vm0, %v1285_v30, inf  ;;  %v1294_v15 = vsel %vm75_vm0, %v1286_v52, inf  ;;  %v1296_v57 = vsel %vm75_vm0, %v1287_v56, inf }
  0xf9   :  { %v1295_v0 = vmin.f32 %v1290_v50, %v1294_v15  ;;  %v1298_v63 = vsel %vm75_vm0, %v1288_v4, inf  ;;  %v1300_v26 = vsel %vm75_vm0, %v1289_v3, inf  ;;  %v1147_v38 = vrot.slane %v3143_v6, 1 }
  0xfa   :  { %v1226_v39 = vrot.slane %v1225_v7, 2  ;;  %v1263_v43 = vmin.f32 %v1261_v44, %v1262_v11  ;;  %v1297_v37 = vmin.f32 %v1291_v8, %v1296_v57  ;;  %v1299_v34 = vmin.f32 %v1292_v12, %v1298_v63 }
  0xfb   :  { %v1301_v60 = vmin.f32 %v1293_v13, %v1300_v26  ;;  %v1320_v48 = vmul.f32 %v1628_v25, %v1748_v14  ;;  %v1321_v32 = vmul.f32 %v1629_v16, %v1754_v17  ;;  %v1185_v35 = vrot.slane %v1184_v58, 1 }
  0xfc   :  { %v1264_v46 = vrot.slane %v1263_v43, 2  ;;  %v1302_v29 = vmin.f32 %v1295_v0, %v1297_v37  ;;  %v1322_v47 = vmul.f32 %v1630_v5, %v1756_v18  ;;  %v1323_v54 = vmul.f32 %v1631_v42, %v1764_v21 }
  0xfd   :  { %v1303_v49 = vmin.f32 %v1299_v34, %v1301_v60  ;;  %v1324_v41 = vmul.f32 %v1632_v1, %v1766_v22  ;;  %v1325_v59 = vmul.f32 %v1633_v31, %v1768_v23  ;;  %v1227_v2 = vmin.f32 %v1225_v7, %v1226_v39 }
  0xfe   :  { %v1326_v53 = vmul.f32 %v1634_v45, %v1770_v24  ;;  %v1327_v55 = vmul.f32 %v1635_v40, %v1778_v27  ;;  %v1328_v14 = vsel %vm75_vm0, %v1320_v48, inf  ;;  %v1265_v17 = vmin.f32 %v1263_v43, %v1264_v46 }
  0xff   :  { %v1304_v61 = vmin.f32 %v1302_v29, %v1303_v49  ;;  %v1329_v36 = vsel %vm75_vm0, %v1321_v32, inf  ;;  %v1330_v18 = vsel %vm75_vm0, %v1322_v47, inf  ;;  %v1331_v21 = vsel %vm75_vm0, %v1323_v54, inf }
 0x100   :  { %v1332_v22 = vsel %vm75_vm0, %v1324_v41, inf  ;;  %v1334_v23 = vsel %vm75_vm0, %v1325_v59, inf  ;;  %v1336_v24 = vsel %vm75_vm0, %v1326_v53, inf  ;;  %v948_v4 = vadd.f32 %v3002_v51, %v2962_v33 }
 0x101   :  { %v1305_v30 = vrot.slane %v1304_v61, 4  ;;  %v1333_v27 = vmin.f32 %v1328_v14, %v1332_v22  ;;  %v1335_v52 = vmin.f32 %v1329_v36, %v1334_v23  ;;  %v1337_v56 = vmin.f32 %v1330_v18, %v1336_v24 }
 0x102   :  { %v1338_v7 = vsel %vm75_vm0, %v1327_v55, inf  ;;  %v1108_v44 = vstv %s3175_s30  ;;  %v1028_v11 = vmul.f32 %v1027_v62, %v1025_v20  ;;  %v1106_v12 = vmin.f32 %v3136_v10, %v3146_v28 }
 0x103   :  { %v1306_v3 = vmin.f32 %v1304_v61, %v1305_v30  ;;  %v1339_v50 = vmin.f32 %v1331_v21, %v1338_v7  ;;  %v1340_v8 = vmin.f32 %v1333_v27, %v1335_v52  ;;  %v1148_v13 = vmin.f32 %v3143_v6, %v1147_v38 }
 0x104   :  { %v1186_v15 = vmin.f32 %v1184_v58, %v1185_v35  ;;  %v1228_v25 = vrot.slane %v1227_v2, 1  ;;  %v1266_v33 = vrot.slane %v1265_v17, 1  ;;  %v1029_v57 = vadd.f32 %v1028_v11, %v948_v4 }
 0x105   :  { %v1307_v51 = vrot.slane %v1306_v3, 2  ;;  %v1341_v16 = vmin.f32 %v1337_v56, %v1339_v50  ;;  %v1109_v63 = vmul.f32 %v1108_v44, %v1106_v12  ;;  %v1189_v62 = vstv %s1602_s4 }
 0x106   :  { %v1187_v26 = vmin.f32 %v1148_v13, %v1186_v15  ;;  %v1229_v5 = vmin.f32 %v1227_v2, %v1228_v25  ;;  %v1267_v39 = vmin.f32 %v1265_v17, %v1266_v33  ;;  %v1270_v38 = vstv %s1619_s10 }
 0x107   :  { %v1342_v0 = vmin.f32 %v1340_v8, %v1341_v16  ;;  %v1308_v9 = vmin.f32 %v1306_v3, %v1307_v51  ;;  %v1110_v43 = vadd.f32 %v1109_v63, %v1029_v57  ;;  %v1351_v45 = vstv %s1636_s22 }
 0x108   :  { %v1190_v10 = vmul.f32 %v1189_v62, %v1187_v26  ;;  %v1268_v6 = vmin.f32 %v1229_v5, %v1267_v39  ;;  %v1355_v35 = vstv %s3226_s1  ;;  %vm1357_vm1 = vcmask 57344  }
 0x109   :  { %v1343_v19 = vrot.slane %v1342_v0, 4  ;;  %v1309_v28 = vrot.slane %v1308_v9, 1 }
 0x10a   :  { %v1191_v42 = vadd.f32 %v1190_v10, %v1110_v43  ;;  %v1271_v1 = vmul.f32 %v1270_v38, %v1268_v6 }
 0x10b   :  { %v1344_v20 = vmin.f32 %v1342_v0, %v1343_v19  ;;  %v1310_v31 = vmin.f32 %v1308_v9, %v1309_v28 }
 0x10c   :  { %v1272_v40 = vadd.f32 %v1271_v1, %v1191_v42 }
 0x10d   :  { %v1345_v58 = vrot.slane %v1344_v20, 2 }
 0x10f   :  { %v1346_v37 = vmin.f32 %v1344_v20, %v1345_v58 }
 0x111   :  { %v1347_v34 = vrot.slane %v1346_v37, 1 }
 0x113   :  { %v1348_v60 = vmin.f32 %v1346_v37, %v1347_v34 }
 0x115   :  { %v1349_v48 = vmin.f32 %v1310_v31, %v1348_v60 }
 0x117   :  { %v1352_v32 = vmul.f32 %v1351_v45, %v1349_v48 }
 0x119   :  { %v1353_v46 = vadd.f32 %v1352_v32, %v1272_v40 }
 0x11b   :  { %v1356_v29 = vadd.f32 %v1355_v35, %v1353_v46 }
 0x11d   :  { %1358 = vst.msk [vmem:[#allocation6] sm:$0x1] %vm1357_vm1, %v1356_v29 }
 0x11e   :  { %1662 = shalt.err (!%p1659_p9)
}
 0x11f   :  { %s1663_s19 = scalar_lea.hbm %s3230_s5, 16 }
 0x120   :  { %p1664_p10 = scmp.ne.s32.totalorder %s3230_s5, %s1663_s19  ;;  %p1667_p11 = scmp.lt.u32.totalorder %s1663_s19, %s3230_s5 }
 0x122   :  { %p1669_p12 = pnand %p1667_p11, %p1664_p10 }
 0x124   :  { %1672 = shalt.err (!%p1669_p12)
}
 0x125   :  { %1368 = dma.vmem_to_hbm [thread:$0]  %s1366_s14, 16, %s3230_s5, [#allocation4]  }
 0x126   :  { %1675 = dma.done.wait [#allocation4], 16  }
 0x127   :  { %1676 = vsyncadd [#allocation4], 4294967280 }
 0x128   :  { %1372 = vsyncpa [#allocation4], 1 }
 0x129   :  { %1373 = vsyncpa [#allocation5], 1 }

</bundles_post_ra>
